<compile_context>
chip_gen: v7x
topology: tpu7x:2x2x1
jax: 0.10.0
libtpu: 0.0.40
codegen_flags: <defaults>
</compile_context>

<pallas_src>
import math

import jax
import jax.numpy as jnp
from jax import lax
from jax.experimental import pallas as pl
from jax.experimental.pallas import tpu as pltpu

# ---------------- scaled-down model config (consistent with the module) ------
IMG = 16            # img_size
PATCH = 8           # patch_size
DEPTH = 2           # depth
NUM_CLASSES = 4
IN_CH = 1
DIM = 32            # d_model
MLP = 64            # dim_feedforward
NHEADS = 4
HEAD_DIM = DIM // NHEADS
NUM_PATCHES = (IMG // PATCH) ** 2
SEQ = NUM_PATCHES + 1
PATCH_DIM = IN_CH * PATCH * PATCH
LN_EPS = 1e-5
VEC_ROWS = 8        # packed per-layer small-vector rows (one (8,128) tile)
VEC_LANES = 128
OUT_LANES = 128     # head output padded to one full lane tile (dense vst)
ROWS_TARGET = 256   # ~MXU rows per grid step on v6e/v7x (use 128 on v5e)
NEG_INF = -1e30     # block-diagonal attention mask value


# ---------------- in-kernel math helpers -------------------------------------
_ERF_C = (-1.26551223, 1.00002368, 0.37409196, 0.09678418, -0.18628806,
          0.27886807, -1.13520398, 1.48851587, -0.82215223, 0.17087277)


def _erf(x):
    # erfc rational approximation (Numerical Recipes 6.2), |err| < 1.2e-7.
    # exp + reciprocal go to the EUP; polynomial is Estrin (short VPU chain).
    a = jnp.abs(x)
    t = pl.reciprocal(1.0 + 0.5 * a, approx=False)
    c = _ERF_C
    t2 = t * t
    t4 = t2 * t2
    t8 = t4 * t4
    p01 = c[0] + c[1] * t
    p23 = c[2] + c[3] * t
    p45 = c[4] + c[5] * t
    p67 = c[6] + c[7] * t
    p89 = c[8] + c[9] * t
    poly = (p01 + p23 * t2) + (p45 + p67 * t2) * t4 + p89 * t8
    erfc = t * jnp.exp(-a * a + poly)
    return jnp.where(x >= 0.0, 1.0 - erfc, erfc - 1.0)


def _gelu(x):
    return 0.5 * x * (1.0 + _erf(x * 0.7071067811865476))


def _layernorm(x, w, b):
    mu = jnp.mean(x, axis=-1, keepdims=True)
    var = jnp.mean(jnp.square(x - mu), axis=-1, keepdims=True)
    return (x - mu) * lax.rsqrt(var + LN_EPS) * w + b


def _bf16(x):
    return x.astype(jnp.bfloat16)


# ---------------- the single fused Pallas kernel ------------------------------
def vit_kernel(patch_ref, pos_ref, mask_ref, pool_ref, convw_ref,
               wqkv_ref, wo_ref, w1_ref, w2_ref, lvec_ref,
               headw_ref, hvec_ref, o_ref):
    """Full ViT forward for a block of B_BLOCK images (rows = B_BLOCK*SEQ)."""
    scale = 1.0 / math.sqrt(HEAD_DIM)
    mask = mask_ref[...]                       # (R, R) block-diag attn mask

    # --- patch embedding + CLS token + positional embedding -------------------
    # Row 0 of each image's SEQ-block in patch_ref is all-zero (CLS slot); the
    # CLS embedding, conv bias and positional embedding are pre-folded into
    # pos_ref, so one matmul + add produces the (R, DIM) token matrix.
    tok = jnp.dot(_bf16(patch_ref[...]), convw_ref[...],
                  preferred_element_type=jnp.float32) + pos_ref[...]
    # dropout: identity in eval mode

    # --- transformer encoder layers (post-norm, GELU), unrolled over DEPTH ----
    for l in range(DEPTH):
        vec = lvec_ref[l]                       # (8, 128) packed small vectors
        bqkv = vec[0:1, 0:3 * DIM]
        bo = vec[1:2, 0:DIM]
        b1 = vec[2:3, 0:MLP]
        b2 = vec[3:4, 0:DIM]
        ln1w, ln1b = vec[4:5, 0:DIM], vec[5:6, 0:DIM]
        ln2w, ln2b = vec[6:7, 0:DIM], vec[7:8, 0:DIM]

        # multi-head self-attention over all images at once (block-diag mask);
        # per-head contexts lane-concatenated, ONE out-projection matmul.
        qkv = jnp.dot(_bf16(tok), wqkv_ref[l],
                      preferred_element_type=jnp.float32) + bqkv
        q = qkv[:, 0:DIM]
        k = qkv[:, DIM:2 * DIM]
        v = qkv[:, 2 * DIM:3 * DIM]
        ctx_heads = []
        for h in range(NHEADS):
            sl = slice(h * HEAD_DIM, (h + 1) * HEAD_DIM)
            s = lax.dot_general(_bf16(q[:, sl]), _bf16(k[:, sl]),
                                (((1,), (1,)), ((), ())),
                                preferred_element_type=jnp.float32)
            s = s * scale + mask
            s = s - jnp.max(s, axis=-1, keepdims=True)
            p = jnp.exp(s)
            p = p * pl.reciprocal(jnp.sum(p, axis=-1, keepdims=True),
                                  approx=True)
            ctx_heads.append(jnp.dot(_bf16(p), _bf16(v[:, sl]),
                                     preferred_element_type=jnp.float32))
        ctx = jnp.concatenate(ctx_heads, axis=-1)            # (R, DIM)
        attn = jnp.dot(_bf16(ctx), wo_ref[l],
                       preferred_element_type=jnp.float32) + bo

        y = _layernorm(tok + attn, ln1w, ln1b)                       # norm1
        h1 = _gelu(jnp.dot(_bf16(y), w1_ref[l],
                           preferred_element_type=jnp.float32) + b1)
        h2 = jnp.dot(_bf16(h1), w2_ref[l],
                     preferred_element_type=jnp.float32) + b2
        tok = _layernorm(y + h2, ln2w, ln2b)                         # norm2

    # --- head: (cls + mean(patch tokens)) -> LayerNorm -> Linear --------------
    hvec = hvec_ref[...]
    nw, nb = hvec[0:1, 0:DIM], hvec[1:2, 0:DIM]
    hb = hvec[2:3, :]                               # (1, OUT_LANES), padded
    # pooling matrix: row i = 1.0 at image-i CLS col, 1/NUM_PATCHES at its
    # patch cols -> pooled = cls + mean(patches) per image, no reshape needed.
    pooled = jnp.dot(pool_ref[...], tok, preferred_element_type=jnp.float32)
    z = _layernorm(pooled, nw, nb)
    o_ref[...] = jnp.dot(_bf16(z), headw_ref[...],
                         preferred_element_type=jnp.float32) + hb


# ---------------- parameters (PyTorch layout) ---------------------------------
def init_params(key):
    ks = jax.random.split(key, 8 + DEPTH)

    def nrm(k, shape, scale=0.02):
        return scale * jax.random.normal(k, shape, dtype=jnp.float32)

    params = {
        "conv_w": nrm(ks[0], (DIM, IN_CH, PATCH, PATCH)),   # Conv2d weight
        "conv_b": nrm(ks[1], (DIM,)),
        "cls": jax.random.normal(ks[2], (1, 1, DIM), dtype=jnp.float32),
        "pos": jax.random.normal(ks[3], (1, SEQ, DIM), dtype=jnp.float32),
        "norm_w": jnp.ones((DIM,), jnp.float32),
        "norm_b": jnp.zeros((DIM,), jnp.float32),
        "head_w": nrm(ks[4], (NUM_CLASSES, DIM)),
        "head_b": nrm(ks[5], (NUM_CLASSES,)),
        "layers": [],
    }
    for d in range(DEPTH):
        lk = jax.random.split(ks[8 + d], 8)
        params["layers"].append({
            "in_proj_w": nrm(lk[0], (3 * DIM, DIM)),
            "in_proj_b": nrm(lk[1], (3 * DIM,)),
            "out_proj_w": nrm(lk[2], (DIM, DIM)),
            "out_proj_b": nrm(lk[3], (DIM,)),
            "lin1_w": nrm(lk[4], (MLP, DIM)),
            "lin1_b": nrm(lk[5], (MLP,)),
            "lin2_w": nrm(lk[6], (DIM, MLP)),
            "lin2_b": nrm(lk[7], (DIM,)),
            "ln1_w": jnp.ones((DIM,), jnp.float32),
            "ln1_b": jnp.zeros((DIM,), jnp.float32),
            "ln2_w": jnp.ones((DIM,), jnp.float32),
            "ln2_b": jnp.zeros((DIM,), jnp.float32),
        })
    return params


# ---------------- one-time parameter packing (transpose / pack / bf16-cast) ---
def pack_params(params):
    # additive table: row 0 = cls + pos[0]; rows 1.. = conv_b + pos[1..]
    pos = params["pos"][0]                                   # (SEQ, DIM)
    pos_adj = pos.at[0].add(params["cls"][0, 0])
    pos_adj = pos_adj.at[1:].add(params["conv_b"][None, :])

    conv_wT = params["conv_w"].reshape(DIM, PATCH_DIM).T     # (PATCH_DIM, DIM)

    wqkv = jnp.stack([lp["in_proj_w"].T for lp in params["layers"]])   # (L,D,3D)
    wo = jnp.stack([lp["out_proj_w"].T for lp in params["layers"]])    # (L,D,D)
    w1 = jnp.stack([lp["lin1_w"].T for lp in params["layers"]])        # (L,D,MLP)
    w2 = jnp.stack([lp["lin2_w"].T for lp in params["layers"]])        # (L,MLP,D)

    def vec_rows(lp):
        rows = jnp.zeros((VEC_ROWS, VEC_LANES), jnp.float32)
        rows = rows.at[0, :3 * DIM].set(lp["in_proj_b"])
        rows = rows.at[1, :DIM].set(lp["out_proj_b"])
        rows = rows.at[2, :MLP].set(lp["lin1_b"])
        rows = rows.at[3, :DIM].set(lp["lin2_b"])
        rows = rows.at[4, :DIM].set(lp["ln1_w"])
        rows = rows.at[5, :DIM].set(lp["ln1_b"])
        rows = rows.at[6, :DIM].set(lp["ln2_w"])
        rows = rows.at[7, :DIM].set(lp["ln2_b"])
        return rows

    lvecs = jnp.stack([vec_rows(lp) for lp in params["layers"]])       # (L,8,128)

    hvecs = jnp.zeros((VEC_ROWS, VEC_LANES), jnp.float32)
    hvecs = hvecs.at[0, :DIM].set(params["norm_w"])
    hvecs = hvecs.at[1, :DIM].set(params["norm_b"])
    hvecs = hvecs.at[2, :NUM_CLASSES].set(params["head_b"])

    # head weight padded to a full 128-lane tile -> dense (unmasked) store
    head_wT = jnp.zeros((DIM, OUT_LANES), jnp.float32)
    head_wT = head_wT.at[:, :NUM_CLASSES].set(params["head_w"].T)

    bf = jnp.bfloat16
    return {
        "pos_adj": pos_adj,                         # f32 (added to f32 acc)
        "conv_wT": conv_wT.astype(bf),
        "wqkv": wqkv.astype(bf), "wo": wo.astype(bf),
        "w1": w1.astype(bf), "w2": w2.astype(bf),
        "lvecs": lvecs,                             # f32 (LN / bias math)
        "head_wT": head_wT.astype(bf), "hvecs": hvecs,
    }


# ---------------- forward pass -------------------------------------------------
def _resident(shape):
    """Full-array block whose index never changes => stays resident in VMEM."""
    zero_idx = (0,) * len(shape)
    return pl.BlockSpec(shape, lambda g: zero_idx)


def _choose_bblock(B):
    """Images per grid step: ~ROWS_TARGET token rows, or the whole (small) batch."""
    bb_max = max(1, ROWS_TARGET // SEQ)
    if B <= bb_max:
        return B                      # single grid step (block == full array)
    # multi-step: keep the (8, .) sublane constraint on both input and output
    return max(8, (bb_max // 8) * 8)


def vit_forward(packed, x):
    B = x.shape[0]
    bb = _choose_bblock(B)            # images per grid step
    nblk = (B + bb - 1) // bb
    b_pad = nblk * bb
    rows = bb * SEQ                   # token rows per grid step

    gh = gw = IMG // PATCH
    # glue: im2col of non-overlapping patches (== stride-P Conv2d), zero row at
    # each image's sequence position 0 for the CLS slot (value comes from pos).
    patches = x.reshape(B, IN_CH, gh, PATCH, gw, PATCH)
    patches = patches.transpose(0, 2, 4, 1, 3, 5)
    patches = patches.reshape(B, NUM_PATCHES, PATCH_DIM)
    patches = jnp.pad(patches, ((0, b_pad - B), (1, 0), (0, 0)))
    patches = patches.reshape(b_pad * SEQ, PATCH_DIM)

    # per-block constants (tiny; traced once under jit)
    pos_tile = jnp.tile(packed["pos_adj"], (bb, 1))            # (rows, DIM) f32
    img_id = jnp.arange(rows, dtype=jnp.int32) // SEQ
    mask = jnp.where(img_id[:, None] == img_id[None, :],
                     0.0, NEG_INF).astype(jnp.float32)         # (rows, rows)
    col = jnp.arange(rows, dtype=jnp.int32)[None, :]
    row = jnp.arange(bb, dtype=jnp.int32)[:, None]
    pool = jnp.where(col // SEQ == row,
                     jnp.where(col % SEQ == 0, 1.0, 1.0 / NUM_PATCHES),
                     0.0).astype(jnp.float32)                  # (bb, rows)

    grid_spec = pltpu.PrefetchScalarGridSpec(
        num_scalar_prefetch=0,
        grid=(nblk,),
        in_specs=[
            pl.BlockSpec((rows, PATCH_DIM), lambda g: (g, 0)),   # patches
            _resident((rows, DIM)),                   # pos/cls/bias table
            _resident((rows, rows)),                  # block-diag attn mask
            _resident((bb, rows)),                    # cls+mean pooling matrix
            _resident((PATCH_DIM, DIM)),              # conv weight (T, bf16)
            _resident((DEPTH, DIM, 3 * DIM)),         # QKV weights (bf16)
            _resident((DEPTH, DIM, DIM)),             # out-proj weights (bf16)
            _resident((DEPTH, DIM, MLP)),             # MLP linear1 (bf16)
            _resident((DEPTH, MLP, DIM)),             # MLP linear2 (bf16)
            _resident((DEPTH, VEC_ROWS, VEC_LANES)),  # packed biases / LN
            _resident((DIM, OUT_LANES)),              # head weight (T, padded)
            _resident((VEC_ROWS, VEC_LANES)),         # packed head vectors
        ],
        out_specs=pl.BlockSpec((bb, OUT_LANES), lambda g: (g, 0)),
    )

    out = pl.pallas_call(
        vit_kernel,
        out_shape=jax.ShapeDtypeStruct((b_pad, OUT_LANES), jnp.float32),
        grid_spec=grid_spec,
        compiler_params=pltpu.CompilerParams(
            dimension_semantics=("parallel",)),
    )(patches, pos_tile, mask, pool, packed["conv_wT"], packed["wqkv"],
      packed["wo"], packed["w1"], packed["w2"], packed["lvecs"],
      packed["head_wT"], packed["hvecs"])
    return out[:B, :NUM_CLASSES]


if __name__ == "__main__":
    key = jax.random.PRNGKey(0)
    pkey, xkey = jax.random.split(key)
    params = init_params(pkey)
    packed = pack_params(params)       # pre-transpose / pack / bf16-cast ONCE
    x = jax.random.normal(xkey, (2, IN_CH, IMG, IMG), dtype=jnp.float32)

    fwd = jax.jit(vit_forward)
    logits = jax.block_until_ready(fwd(packed, x))
    assert logits.shape == (2, NUM_CLASSES)
    assert bool(jnp.all(jnp.isfinite(logits)))
    print("KERNEL_OK")
</pallas_src>

<mosaic_0001>
module attributes {stable_mosaic.version = 11 : i64} {
  func.func @vit_kernel(%arg0: i32, %arg1: memref<10x64xf32, #tpu.memory_space<vmem>>, %arg2: memref<10x32xf32, #tpu.memory_space<vmem>>, %arg3: memref<10x10xf32, #tpu.memory_space<vmem>>, %arg4: memref<2x10xf32, #tpu.memory_space<vmem>>, %arg5: memref<64x32xbf16, #tpu.memory_space<vmem>>, %arg6: memref<2x32x96xbf16, #tpu.memory_space<vmem>>, %arg7: memref<2x32x32xbf16, #tpu.memory_space<vmem>>, %arg8: memref<2x32x64xbf16, #tpu.memory_space<vmem>>, %arg9: memref<2x64x32xbf16, #tpu.memory_space<vmem>>, %arg10: memref<2x8x128xf32, #tpu.memory_space<vmem>>, %arg11: memref<32x128xbf16, #tpu.memory_space<vmem>>, %arg12: memref<8x128xf32, #tpu.memory_space<vmem>>, %arg13: memref<2x128xf32, #tpu.memory_space<vmem>>) attributes {dimension_semantics = [#tpu.dimension_semantics<parallel>], iteration_bounds = array<i64: 1>, scalar_prefetch = 0 : i64, scratch_operands = 0 : i64, tpu.core_type = #tpu.core_type<tc>, window_params = [{transform_indices = @transform_0, window_bounds = array<i64: 10, 64>}, {pipeline_mode = #tpu.pipeline_mode<synchronous>, transform_indices = @transform_1, window_bounds = array<i64: 10, 32>}, {pipeline_mode = #tpu.pipeline_mode<synchronous>, transform_indices = @transform_2, window_bounds = array<i64: 10, 10>}, {pipeline_mode = #tpu.pipeline_mode<synchronous>, transform_indices = @transform_3, window_bounds = array<i64: 2, 10>}, {pipeline_mode = #tpu.pipeline_mode<synchronous>, transform_indices = @transform_4, window_bounds = array<i64: 64, 32>}, {pipeline_mode = #tpu.pipeline_mode<synchronous>, transform_indices = @transform_5, window_bounds = array<i64: 2, 32, 96>}, {pipeline_mode = #tpu.pipeline_mode<synchronous>, transform_indices = @transform_6, window_bounds = array<i64: 2, 32, 32>}, {pipeline_mode = #tpu.pipeline_mode<synchronous>, transform_indices = @transform_7, window_bounds = array<i64: 2, 32, 64>}, {pipeline_mode = #tpu.pipeline_mode<synchronous>, transform_indices = @transform_8, window_bounds = array<i64: 2, 64, 32>}, {pipeline_mode = #tpu.pipeline_mode<synchronous>, transform_indices = @transform_9, window_bounds = array<i64: 2, 8, 128>}, {pipeline_mode = #tpu.pipeline_mode<synchronous>, transform_indices = @transform_10, window_bounds = array<i64: 32, 128>}, {pipeline_mode = #tpu.pipeline_mode<synchronous>, transform_indices = @transform_11, window_bounds = array<i64: 8, 128>}, {transform_indices = @transform_12, window_bounds = array<i64: 2, 128>}]} {
    %c0 = arith.constant 0 : index
    %c0_0 = arith.constant 0 : index
    %0 = vector.load %arg3[%c0, %c0_0] : memref<10x10xf32, #tpu.memory_space<vmem>>, vector<10x10xf32>
    %c0_1 = arith.constant 0 : index
    %c0_2 = arith.constant 0 : index
    %1 = vector.load %arg1[%c0_1, %c0_2] : memref<10x64xf32, #tpu.memory_space<vmem>>, vector<10x64xf32>
    %2 = arith.truncf %1 : vector<10x64xf32> to vector<10x64xbf16>
    %c0_3 = arith.constant 0 : index
    %c0_4 = arith.constant 0 : index
    %3 = vector.load %arg5[%c0_3, %c0_4] : memref<64x32xbf16, #tpu.memory_space<vmem>>, vector<64x32xbf16>
    %cst = arith.constant dense<0.000000e+00> : vector<10x32xf32>
    %4 = tpu.matmul %2, %3, %cst {dimension_numbers = #tpu.dot_dimension_numbers<[1], [0], [0], [1], [0, 0, 1, 1], [], []>} : vector<10x64xbf16>, vector<64x32xbf16>, vector<10x32xf32> -> vector<10x32xf32>
    %c0_5 = arith.constant 0 : index
    %c0_6 = arith.constant 0 : index
    %5 = vector.load %arg2[%c0_5, %c0_6] : memref<10x32xf32, #tpu.memory_space<vmem>>, vector<10x32xf32>
    %6 = arith.addf %4, %5 : vector<10x32xf32>
    %c0_7 = arith.constant 0 : index
    %c0_8 = arith.constant 0 : index
    %c0_9 = arith.constant 0 : index
    %7 = vector.load %arg10[%c0_7, %c0_8, %c0_9] : memref<2x8x128xf32, #tpu.memory_space<vmem>>, vector<1x8x128xf32>
    %8 = vector.shape_cast %7 : vector<1x8x128xf32> to vector<8x128xf32>
    %9 = vector.extract_strided_slice %8 {offsets = [0, 0], sizes = [1, 96], strides = [1, 1]} : vector<8x128xf32> to vector<1x96xf32>
    %10 = vector.extract_strided_slice %8 {offsets = [1, 0], sizes = [1, 32], strides = [1, 1]} : vector<8x128xf32> to vector<1x32xf32>
    %11 = vector.extract_strided_slice %8 {offsets = [2, 0], sizes = [1, 64], strides = [1, 1]} : vector<8x128xf32> to vector<1x64xf32>
    %12 = vector.extract_strided_slice %8 {offsets = [3, 0], sizes = [1, 32], strides = [1, 1]} : vector<8x128xf32> to vector<1x32xf32>
    %13 = vector.extract_strided_slice %8 {offsets = [4, 0], sizes = [1, 32], strides = [1, 1]} : vector<8x128xf32> to vector<1x32xf32>
    %14 = vector.extract_strided_slice %8 {offsets = [5, 0], sizes = [1, 32], strides = [1, 1]} : vector<8x128xf32> to vector<1x32xf32>
    %15 = vector.extract_strided_slice %8 {offsets = [6, 0], sizes = [1, 32], strides = [1, 1]} : vector<8x128xf32> to vector<1x32xf32>
    %16 = vector.extract_strided_slice %8 {offsets = [7, 0], sizes = [1, 32], strides = [1, 1]} : vector<8x128xf32> to vector<1x32xf32>
    %17 = arith.truncf %6 : vector<10x32xf32> to vector<10x32xbf16>
    %c0_10 = arith.constant 0 : index
    %c0_11 = arith.constant 0 : index
    %c0_12 = arith.constant 0 : index
    %18 = vector.load %arg6[%c0_10, %c0_11, %c0_12] : memref<2x32x96xbf16, #tpu.memory_space<vmem>>, vector<1x32x96xbf16>
    %19 = vector.shape_cast %18 : vector<1x32x96xbf16> to vector<32x96xbf16>
    %cst_13 = arith.constant dense<0.000000e+00> : vector<10x96xf32>
    %20 = tpu.matmul %17, %19, %cst_13 {dimension_numbers = #tpu.dot_dimension_numbers<[1], [0], [0], [1], [0, 0, 1, 1], [], []>} : vector<10x32xbf16>, vector<32x96xbf16>, vector<10x96xf32> -> vector<10x96xf32>
    %21 = vector.broadcast %9 : vector<1x96xf32> to vector<10x96xf32>
    %22 = arith.addf %20, %21 : vector<10x96xf32>
    %23 = vector.extract_strided_slice %22 {offsets = [0, 0], sizes = [10, 32], strides = [1, 1]} : vector<10x96xf32> to vector<10x32xf32>
    %24 = vector.extract_strided_slice %22 {offsets = [0, 32], sizes = [10, 32], strides = [1, 1]} : vector<10x96xf32> to vector<10x32xf32>
    %25 = vector.extract_strided_slice %22 {offsets = [0, 64], sizes = [10, 32], strides = [1, 1]} : vector<10x96xf32> to vector<10x32xf32>
    %26 = vector.extract_strided_slice %23 {offsets = [0, 0], sizes = [10, 8], strides = [1, 1]} : vector<10x32xf32> to vector<10x8xf32>
    %27 = arith.truncf %26 : vector<10x8xf32> to vector<10x8xbf16>
    %28 = vector.extract_strided_slice %24 {offsets = [0, 0], sizes = [10, 8], strides = [1, 1]} : vector<10x32xf32> to vector<10x8xf32>
    %29 = arith.truncf %28 : vector<10x8xf32> to vector<10x8xbf16>
    %cst_14 = arith.constant dense<0.000000e+00> : vector<10x10xf32>
    %30 = tpu.matmul %27, %29, %cst_14 {dimension_numbers = #tpu.dot_dimension_numbers<[1], [1], [0], [0], [0, 0, 1, 0], [], []>} : vector<10x8xbf16>, vector<10x8xbf16>, vector<10x10xf32> -> vector<10x10xf32>
    %cst_15 = arith.constant 0.353553385 : f32
    %31 = vector.broadcast %cst_15 : f32 to vector<10x10xf32>
    %32 = arith.mulf %30, %31 : vector<10x10xf32>
    %33 = arith.addf %32, %0 : vector<10x10xf32>
    %cst_16 = arith.constant dense<0xFF800000> : vector<10xf32>
    %34 = vector.multi_reduction <maximumf>, %33, %cst_16 [1] : vector<10x10xf32> to vector<10xf32>
    %35 = vector.shape_cast %34 : vector<10xf32> to vector<10x1xf32>
    %36 = vector.broadcast %35 : vector<10x1xf32> to vector<10x10xf32>
    %37 = arith.subf %33, %36 : vector<10x10xf32>
    %38 = math.exp %37 : vector<10x10xf32>
    %cst_17 = arith.constant dense<0.000000e+00> : vector<10xf32>
    %39 = vector.multi_reduction <add>, %38, %cst_17 [1] : vector<10x10xf32> to vector<10xf32>
    %40 = vector.shape_cast %39 : vector<10xf32> to vector<10x1xf32>
    %41 = tpu.reciprocal %40 {approx = true} : vector<10x1xf32> -> vector<10x1xf32>
    %42 = vector.broadcast %41 : vector<10x1xf32> to vector<10x10xf32>
    %43 = arith.mulf %38, %42 : vector<10x10xf32>
    %44 = arith.truncf %43 : vector<10x10xf32> to vector<10x10xbf16>
    %45 = vector.extract_strided_slice %25 {offsets = [0, 0], sizes = [10, 8], strides = [1, 1]} : vector<10x32xf32> to vector<10x8xf32>
    %46 = arith.truncf %45 : vector<10x8xf32> to vector<10x8xbf16>
    %cst_18 = arith.constant dense<0.000000e+00> : vector<10x8xf32>
    %47 = tpu.matmul %44, %46, %cst_18 {dimension_numbers = #tpu.dot_dimension_numbers<[1], [0], [0], [1], [0, 0, 1, 1], [], []>} : vector<10x10xbf16>, vector<10x8xbf16>, vector<10x8xf32> -> vector<10x8xf32>
    %48 = vector.extract_strided_slice %23 {offsets = [0, 8], sizes = [10, 8], strides = [1, 1]} : vector<10x32xf32> to vector<10x8xf32>
    %49 = arith.truncf %48 : vector<10x8xf32> to vector<10x8xbf16>
    %50 = vector.extract_strided_slice %24 {offsets = [0, 8], sizes = [10, 8], strides = [1, 1]} : vector<10x32xf32> to vector<10x8xf32>
    %51 = arith.truncf %50 : vector<10x8xf32> to vector<10x8xbf16>
    %cst_19 = arith.constant dense<0.000000e+00> : vector<10x10xf32>
    %52 = tpu.matmul %49, %51, %cst_19 {dimension_numbers = #tpu.dot_dimension_numbers<[1], [1], [0], [0], [0, 0, 1, 0], [], []>} : vector<10x8xbf16>, vector<10x8xbf16>, vector<10x10xf32> -> vector<10x10xf32>
    %cst_20 = arith.constant 0.353553385 : f32
    %53 = vector.broadcast %cst_20 : f32 to vector<10x10xf32>
    %54 = arith.mulf %52, %53 : vector<10x10xf32>
    %55 = arith.addf %54, %0 : vector<10x10xf32>
    %cst_21 = arith.constant dense<0xFF800000> : vector<10xf32>
    %56 = vector.multi_reduction <maximumf>, %55, %cst_21 [1] : vector<10x10xf32> to vector<10xf32>
    %57 = vector.shape_cast %56 : vector<10xf32> to vector<10x1xf32>
    %58 = vector.broadcast %57 : vector<10x1xf32> to vector<10x10xf32>
    %59 = arith.subf %55, %58 : vector<10x10xf32>
    %60 = math.exp %59 : vector<10x10xf32>
    %cst_22 = arith.constant dense<0.000000e+00> : vector<10xf32>
    %61 = vector.multi_reduction <add>, %60, %cst_22 [1] : vector<10x10xf32> to vector<10xf32>
    %62 = vector.shape_cast %61 : vector<10xf32> to vector<10x1xf32>
    %63 = tpu.reciprocal %62 {approx = true} : vector<10x1xf32> -> vector<10x1xf32>
    %64 = vector.broadcast %63 : vector<10x1xf32> to vector<10x10xf32>
    %65 = arith.mulf %60, %64 : vector<10x10xf32>
    %66 = arith.truncf %65 : vector<10x10xf32> to vector<10x10xbf16>
    %67 = vector.extract_strided_slice %25 {offsets = [0, 8], sizes = [10, 8], strides = [1, 1]} : vector<10x32xf32> to vector<10x8xf32>
    %68 = arith.truncf %67 : vector<10x8xf32> to vector<10x8xbf16>
    %cst_23 = arith.constant dense<0.000000e+00> : vector<10x8xf32>
    %69 = tpu.matmul %66, %68, %cst_23 {dimension_numbers = #tpu.dot_dimension_numbers<[1], [0], [0], [1], [0, 0, 1, 1], [], []>} : vector<10x10xbf16>, vector<10x8xbf16>, vector<10x8xf32> -> vector<10x8xf32>
    %70 = vector.extract_strided_slice %23 {offsets = [0, 16], sizes = [10, 8], strides = [1, 1]} : vector<10x32xf32> to vector<10x8xf32>
    %71 = arith.truncf %70 : vector<10x8xf32> to vector<10x8xbf16>
    %72 = vector.extract_strided_slice %24 {offsets = [0, 16], sizes = [10, 8], strides = [1, 1]} : vector<10x32xf32> to vector<10x8xf32>
    %73 = arith.truncf %72 : vector<10x8xf32> to vector<10x8xbf16>
    %cst_24 = arith.constant dense<0.000000e+00> : vector<10x10xf32>
    %74 = tpu.matmul %71, %73, %cst_24 {dimension_numbers = #tpu.dot_dimension_numbers<[1], [1], [0], [0], [0, 0, 1, 0], [], []>} : vector<10x8xbf16>, vector<10x8xbf16>, vector<10x10xf32> -> vector<10x10xf32>
    %cst_25 = arith.constant 0.353553385 : f32
    %75 = vector.broadcast %cst_25 : f32 to vector<10x10xf32>
    %76 = arith.mulf %74, %75 : vector<10x10xf32>
    %77 = arith.addf %76, %0 : vector<10x10xf32>
    %cst_26 = arith.constant dense<0xFF800000> : vector<10xf32>
    %78 = vector.multi_reduction <maximumf>, %77, %cst_26 [1] : vector<10x10xf32> to vector<10xf32>
    %79 = vector.shape_cast %78 : vector<10xf32> to vector<10x1xf32>
    %80 = vector.broadcast %79 : vector<10x1xf32> to vector<10x10xf32>
    %81 = arith.subf %77, %80 : vector<10x10xf32>
    %82 = math.exp %81 : vector<10x10xf32>
    %cst_27 = arith.constant dense<0.000000e+00> : vector<10xf32>
    %83 = vector.multi_reduction <add>, %82, %cst_27 [1] : vector<10x10xf32> to vector<10xf32>
    %84 = vector.shape_cast %83 : vector<10xf32> to vector<10x1xf32>
    %85 = tpu.reciprocal %84 {approx = true} : vector<10x1xf32> -> vector<10x1xf32>
    %86 = vector.broadcast %85 : vector<10x1xf32> to vector<10x10xf32>
    %87 = arith.mulf %82, %86 : vector<10x10xf32>
    %88 = arith.truncf %87 : vector<10x10xf32> to vector<10x10xbf16>
    %89 = vector.extract_strided_slice %25 {offsets = [0, 16], sizes = [10, 8], strides = [1, 1]} : vector<10x32xf32> to vector<10x8xf32>
    %90 = arith.truncf %89 : vector<10x8xf32> to vector<10x8xbf16>
    %cst_28 = arith.constant dense<0.000000e+00> : vector<10x8xf32>
    %91 = tpu.matmul %88, %90, %cst_28 {dimension_numbers = #tpu.dot_dimension_numbers<[1], [0], [0], [1], [0, 0, 1, 1], [], []>} : vector<10x10xbf16>, vector<10x8xbf16>, vector<10x8xf32> -> vector<10x8xf32>
    %92 = vector.extract_strided_slice %23 {offsets = [0, 24], sizes = [10, 8], strides = [1, 1]} : vector<10x32xf32> to vector<10x8xf32>
    %93 = arith.truncf %92 : vector<10x8xf32> to vector<10x8xbf16>
    %94 = vector.extract_strided_slice %24 {offsets = [0, 24], sizes = [10, 8], strides = [1, 1]} : vector<10x32xf32> to vector<10x8xf32>
    %95 = arith.truncf %94 : vector<10x8xf32> to vector<10x8xbf16>
    %cst_29 = arith.constant dense<0.000000e+00> : vector<10x10xf32>
    %96 = tpu.matmul %93, %95, %cst_29 {dimension_numbers = #tpu.dot_dimension_numbers<[1], [1], [0], [0], [0, 0, 1, 0], [], []>} : vector<10x8xbf16>, vector<10x8xbf16>, vector<10x10xf32> -> vector<10x10xf32>
    %cst_30 = arith.constant 0.353553385 : f32
    %97 = vector.broadcast %cst_30 : f32 to vector<10x10xf32>
    %98 = arith.mulf %96, %97 : vector<10x10xf32>
    %99 = arith.addf %98, %0 : vector<10x10xf32>
    %cst_31 = arith.constant dense<0xFF800000> : vector<10xf32>
    %100 = vector.multi_reduction <maximumf>, %99, %cst_31 [1] : vector<10x10xf32> to vector<10xf32>
    %101 = vector.shape_cast %100 : vector<10xf32> to vector<10x1xf32>
    %102 = vector.broadcast %101 : vector<10x1xf32> to vector<10x10xf32>
    %103 = arith.subf %99, %102 : vector<10x10xf32>
    %104 = math.exp %103 : vector<10x10xf32>
    %cst_32 = arith.constant dense<0.000000e+00> : vector<10xf32>
    %105 = vector.multi_reduction <add>, %104, %cst_32 [1] : vector<10x10xf32> to vector<10xf32>
    %106 = vector.shape_cast %105 : vector<10xf32> to vector<10x1xf32>
    %107 = tpu.reciprocal %106 {approx = true} : vector<10x1xf32> -> vector<10x1xf32>
    %108 = vector.broadcast %107 : vector<10x1xf32> to vector<10x10xf32>
    %109 = arith.mulf %104, %108 : vector<10x10xf32>
    %110 = arith.truncf %109 : vector<10x10xf32> to vector<10x10xbf16>
    %111 = vector.extract_strided_slice %25 {offsets = [0, 24], sizes = [10, 8], strides = [1, 1]} : vector<10x32xf32> to vector<10x8xf32>
    %112 = arith.truncf %111 : vector<10x8xf32> to vector<10x8xbf16>
    %cst_33 = arith.constant dense<0.000000e+00> : vector<10x8xf32>
    %113 = tpu.matmul %110, %112, %cst_33 {dimension_numbers = #tpu.dot_dimension_numbers<[1], [0], [0], [1], [0, 0, 1, 1], [], []>} : vector<10x10xbf16>, vector<10x8xbf16>, vector<10x8xf32> -> vector<10x8xf32>
    %114 = tpu.concatenate %47, %69, %91, %113 in 1 : vector<10x8xf32>, vector<10x8xf32>, vector<10x8xf32>, vector<10x8xf32> -> vector<10x32xf32>
    %115 = arith.truncf %114 : vector<10x32xf32> to vector<10x32xbf16>
    %c0_34 = arith.constant 0 : index
    %c0_35 = arith.constant 0 : index
    %c0_36 = arith.constant 0 : index
    %116 = vector.load %arg7[%c0_34, %c0_35, %c0_36] : memref<2x32x32xbf16, #tpu.memory_space<vmem>>, vector<1x32x32xbf16>
    %117 = vector.shape_cast %116 : vector<1x32x32xbf16> to vector<32x32xbf16>
    %cst_37 = arith.constant dense<0.000000e+00> : vector<10x32xf32>
    %118 = tpu.matmul %115, %117, %cst_37 {dimension_numbers = #tpu.dot_dimension_numbers<[1], [0], [0], [1], [0, 0, 1, 1], [], []>} : vector<10x32xbf16>, vector<32x32xbf16>, vector<10x32xf32> -> vector<10x32xf32>
    %119 = vector.broadcast %10 : vector<1x32xf32> to vector<10x32xf32>
    %120 = arith.addf %118, %119 : vector<10x32xf32>
    %121 = arith.addf %6, %120 : vector<10x32xf32>
    %cst_38 = arith.constant dense<0.000000e+00> : vector<10xf32>
    %122 = vector.multi_reduction <add>, %121, %cst_38 [1] : vector<10x32xf32> to vector<10xf32>
    %123 = vector.shape_cast %122 : vector<10xf32> to vector<10x1xf32>
    %cst_39 = arith.constant 3.200000e+01 : f32
    %124 = vector.broadcast %cst_39 : f32 to vector<10x1xf32>
    %125 = arith.divf %123, %124 : vector<10x1xf32>
    %126 = vector.broadcast %125 : vector<10x1xf32> to vector<10x32xf32>
    %127 = arith.subf %121, %126 : vector<10x32xf32>
    %128 = arith.mulf %127, %127 : vector<10x32xf32>
    %cst_40 = arith.constant dense<0.000000e+00> : vector<10xf32>
    %129 = vector.multi_reduction <add>, %128, %cst_40 [1] : vector<10x32xf32> to vector<10xf32>
    %130 = vector.shape_cast %129 : vector<10xf32> to vector<10x1xf32>
    %cst_41 = arith.constant 3.200000e+01 : f32
    %131 = vector.broadcast %cst_41 : f32 to vector<10x1xf32>
    %132 = arith.divf %130, %131 : vector<10x1xf32>
    %133 = vector.broadcast %125 : vector<10x1xf32> to vector<10x32xf32>
    %134 = arith.subf %121, %133 : vector<10x32xf32>
    %cst_42 = arith.constant 9.99999974E-6 : f32
    %135 = vector.broadcast %cst_42 : f32 to vector<10x1xf32>
    %136 = arith.addf %132, %135 : vector<10x1xf32>
    %137 = math.rsqrt %136 : vector<10x1xf32>
    %138 = vector.broadcast %137 : vector<10x1xf32> to vector<10x32xf32>
    %139 = arith.mulf %134, %138 : vector<10x32xf32>
    %140 = vector.broadcast %13 : vector<1x32xf32> to vector<10x32xf32>
    %141 = arith.mulf %139, %140 : vector<10x32xf32>
    %142 = vector.broadcast %14 : vector<1x32xf32> to vector<10x32xf32>
    %143 = arith.addf %141, %142 : vector<10x32xf32>
    %144 = arith.truncf %143 : vector<10x32xf32> to vector<10x32xbf16>
    %c0_43 = arith.constant 0 : index
    %c0_44 = arith.constant 0 : index
    %c0_45 = arith.constant 0 : index
    %145 = vector.load %arg8[%c0_43, %c0_44, %c0_45] : memref<2x32x64xbf16, #tpu.memory_space<vmem>>, vector<1x32x64xbf16>
    %146 = vector.shape_cast %145 : vector<1x32x64xbf16> to vector<32x64xbf16>
    %cst_46 = arith.constant dense<0.000000e+00> : vector<10x64xf32>
    %147 = tpu.matmul %144, %146, %cst_46 {dimension_numbers = #tpu.dot_dimension_numbers<[1], [0], [0], [1], [0, 0, 1, 1], [], []>} : vector<10x32xbf16>, vector<32x64xbf16>, vector<10x64xf32> -> vector<10x64xf32>
    %148 = vector.broadcast %11 : vector<1x64xf32> to vector<10x64xf32>
    %149 = arith.addf %147, %148 : vector<10x64xf32>
    %cst_47 = arith.constant 5.000000e-01 : f32
    %150 = vector.broadcast %cst_47 : f32 to vector<10x64xf32>
    %151 = arith.mulf %150, %149 : vector<10x64xf32>
    %cst_48 = arith.constant 0.707106769 : f32
    %152 = vector.broadcast %cst_48 : f32 to vector<10x64xf32>
    %153 = arith.mulf %149, %152 : vector<10x64xf32>
    %154 = math.absf %153 : vector<10x64xf32>
    %cst_49 = arith.constant 5.000000e-01 : f32
    %155 = vector.broadcast %cst_49 : f32 to vector<10x64xf32>
    %156 = arith.mulf %155, %154 : vector<10x64xf32>
    %cst_50 = arith.constant 1.000000e+00 : f32
    %157 = vector.broadcast %cst_50 : f32 to vector<10x64xf32>
    %158 = arith.addf %157, %156 : vector<10x64xf32>
    %159 = tpu.reciprocal %158 : vector<10x64xf32> -> vector<10x64xf32>
    %160 = arith.mulf %159, %159 : vector<10x64xf32>
    %161 = arith.mulf %160, %160 : vector<10x64xf32>
    %162 = arith.mulf %161, %161 : vector<10x64xf32>
    %cst_51 = arith.constant 1.00002372 : f32
    %163 = vector.broadcast %cst_51 : f32 to vector<10x64xf32>
    %164 = arith.mulf %163, %159 : vector<10x64xf32>
    %cst_52 = arith.constant -1.26551223 : f32
    %165 = vector.broadcast %cst_52 : f32 to vector<10x64xf32>
    %166 = arith.addf %165, %164 : vector<10x64xf32>
    %cst_53 = arith.constant 0.0967841818 : f32
    %167 = vector.broadcast %cst_53 : f32 to vector<10x64xf32>
    %168 = arith.mulf %167, %159 : vector<10x64xf32>
    %cst_54 = arith.constant 0.374091953 : f32
    %169 = vector.broadcast %cst_54 : f32 to vector<10x64xf32>
    %170 = arith.addf %169, %168 : vector<10x64xf32>
    %cst_55 = arith.constant 0.278868079 : f32
    %171 = vector.broadcast %cst_55 : f32 to vector<10x64xf32>
    %172 = arith.mulf %171, %159 : vector<10x64xf32>
    %cst_56 = arith.constant -0.186288059 : f32
    %173 = vector.broadcast %cst_56 : f32 to vector<10x64xf32>
    %174 = arith.addf %173, %172 : vector<10x64xf32>
    %cst_57 = arith.constant 1.48851585 : f32
    %175 = vector.broadcast %cst_57 : f32 to vector<10x64xf32>
    %176 = arith.mulf %175, %159 : vector<10x64xf32>
    %cst_58 = arith.constant -1.13520396 : f32
    %177 = vector.broadcast %cst_58 : f32 to vector<10x64xf32>
    %178 = arith.addf %177, %176 : vector<10x64xf32>
    %cst_59 = arith.constant 0.170872763 : f32
    %179 = vector.broadcast %cst_59 : f32 to vector<10x64xf32>
    %180 = arith.mulf %179, %159 : vector<10x64xf32>
    %cst_60 = arith.constant -0.822152256 : f32
    %181 = vector.broadcast %cst_60 : f32 to vector<10x64xf32>
    %182 = arith.addf %181, %180 : vector<10x64xf32>
    %183 = arith.mulf %170, %160 : vector<10x64xf32>
    %184 = arith.addf %166, %183 : vector<10x64xf32>
    %185 = arith.mulf %178, %160 : vector<10x64xf32>
    %186 = arith.addf %174, %185 : vector<10x64xf32>
    %187 = arith.mulf %186, %161 : vector<10x64xf32>
    %188 = arith.addf %184, %187 : vector<10x64xf32>
    %189 = arith.mulf %182, %162 : vector<10x64xf32>
    %190 = arith.addf %188, %189 : vector<10x64xf32>
    %cst_61 = arith.constant 0.000000e+00 : f32
    %191 = vector.broadcast %cst_61 : f32 to vector<10x64xf32>
    %192 = arith.subf %191, %154 : vector<10x64xf32>
    %193 = arith.mulf %192, %154 : vector<10x64xf32>
    %194 = arith.addf %193, %190 : vector<10x64xf32>
    %195 = math.exp %194 : vector<10x64xf32>
    %196 = arith.mulf %159, %195 : vector<10x64xf32>
    %cst_62 = arith.constant 0.000000e+00 : f32
    %197 = vector.broadcast %cst_62 : f32 to vector<10x64xf32>
    %198 = arith.cmpf oge, %153, %197 : vector<10x64xf32>
    %cst_63 = arith.constant 1.000000e+00 : f32
    %199 = vector.broadcast %cst_63 : f32 to vector<10x64xf32>
    %200 = arith.subf %199, %196 : vector<10x64xf32>
    %cst_64 = arith.constant 1.000000e+00 : f32
    %201 = vector.broadcast %cst_64 : f32 to vector<10x64xf32>
    %202 = arith.subf %196, %201 : vector<10x64xf32>
    %203 = arith.select %198, %200, %202 : vector<10x64xi1>, vector<10x64xf32>
    %cst_65 = arith.constant 1.000000e+00 : f32
    %204 = vector.broadcast %cst_65 : f32 to vector<10x64xf32>
    %205 = arith.addf %204, %203 : vector<10x64xf32>
    %206 = arith.mulf %151, %205 : vector<10x64xf32>
    %207 = arith.truncf %206 : vector<10x64xf32> to vector<10x64xbf16>
    %c0_66 = arith.constant 0 : index
    %c0_67 = arith.constant 0 : index
    %c0_68 = arith.constant 0 : index
    %208 = vector.load %arg9[%c0_66, %c0_67, %c0_68] : memref<2x64x32xbf16, #tpu.memory_space<vmem>>, vector<1x64x32xbf16>
    %209 = vector.shape_cast %208 : vector<1x64x32xbf16> to vector<64x32xbf16>
    %cst_69 = arith.constant dense<0.000000e+00> : vector<10x32xf32>
    %210 = tpu.matmul %207, %209, %cst_69 {dimension_numbers = #tpu.dot_dimension_numbers<[1], [0], [0], [1], [0, 0, 1, 1], [], []>} : vector<10x64xbf16>, vector<64x32xbf16>, vector<10x32xf32> -> vector<10x32xf32>
    %211 = vector.broadcast %12 : vector<1x32xf32> to vector<10x32xf32>
    %212 = arith.addf %210, %211 : vector<10x32xf32>
    %213 = arith.addf %143, %212 : vector<10x32xf32>
    %cst_70 = arith.constant dense<0.000000e+00> : vector<10xf32>
    %214 = vector.multi_reduction <add>, %213, %cst_70 [1] : vector<10x32xf32> to vector<10xf32>
    %215 = vector.shape_cast %214 : vector<10xf32> to vector<10x1xf32>
    %cst_71 = arith.constant 3.200000e+01 : f32
    %216 = vector.broadcast %cst_71 : f32 to vector<10x1xf32>
    %217 = arith.divf %215, %216 : vector<10x1xf32>
    %218 = vector.broadcast %217 : vector<10x1xf32> to vector<10x32xf32>
    %219 = arith.subf %213, %218 : vector<10x32xf32>
    %220 = arith.mulf %219, %219 : vector<10x32xf32>
    %cst_72 = arith.constant dense<0.000000e+00> : vector<10xf32>
    %221 = vector.multi_reduction <add>, %220, %cst_72 [1] : vector<10x32xf32> to vector<10xf32>
    %222 = vector.shape_cast %221 : vector<10xf32> to vector<10x1xf32>
    %cst_73 = arith.constant 3.200000e+01 : f32
    %223 = vector.broadcast %cst_73 : f32 to vector<10x1xf32>
    %224 = arith.divf %222, %223 : vector<10x1xf32>
    %225 = vector.broadcast %217 : vector<10x1xf32> to vector<10x32xf32>
    %226 = arith.subf %213, %225 : vector<10x32xf32>
    %cst_74 = arith.constant 9.99999974E-6 : f32
    %227 = vector.broadcast %cst_74 : f32 to vector<10x1xf32>
    %228 = arith.addf %224, %227 : vector<10x1xf32>
    %229 = math.rsqrt %228 : vector<10x1xf32>
    %230 = vector.broadcast %229 : vector<10x1xf32> to vector<10x32xf32>
    %231 = arith.mulf %226, %230 : vector<10x32xf32>
    %232 = vector.broadcast %15 : vector<1x32xf32> to vector<10x32xf32>
    %233 = arith.mulf %231, %232 : vector<10x32xf32>
    %234 = vector.broadcast %16 : vector<1x32xf32> to vector<10x32xf32>
    %235 = arith.addf %233, %234 : vector<10x32xf32>
    %c1 = arith.constant 1 : index
    %c0_75 = arith.constant 0 : index
    %c0_76 = arith.constant 0 : index
    %236 = vector.load %arg10[%c1, %c0_75, %c0_76] : memref<2x8x128xf32, #tpu.memory_space<vmem>>, vector<1x8x128xf32>
    %237 = vector.shape_cast %236 : vector<1x8x128xf32> to vector<8x128xf32>
    %238 = vector.extract_strided_slice %237 {offsets = [0, 0], sizes = [1, 96], strides = [1, 1]} : vector<8x128xf32> to vector<1x96xf32>
    %239 = vector.extract_strided_slice %237 {offsets = [1, 0], sizes = [1, 32], strides = [1, 1]} : vector<8x128xf32> to vector<1x32xf32>
    %240 = vector.extract_strided_slice %237 {offsets = [2, 0], sizes = [1, 64], strides = [1, 1]} : vector<8x128xf32> to vector<1x64xf32>
    %241 = vector.extract_strided_slice %237 {offsets = [3, 0], sizes = [1, 32], strides = [1, 1]} : vector<8x128xf32> to vector<1x32xf32>
    %242 = vector.extract_strided_slice %237 {offsets = [4, 0], sizes = [1, 32], strides = [1, 1]} : vector<8x128xf32> to vector<1x32xf32>
    %243 = vector.extract_strided_slice %237 {offsets = [5, 0], sizes = [1, 32], strides = [1, 1]} : vector<8x128xf32> to vector<1x32xf32>
    %244 = vector.extract_strided_slice %237 {offsets = [6, 0], sizes = [1, 32], strides = [1, 1]} : vector<8x128xf32> to vector<1x32xf32>
    %245 = vector.extract_strided_slice %237 {offsets = [7, 0], sizes = [1, 32], strides = [1, 1]} : vector<8x128xf32> to vector<1x32xf32>
    %246 = arith.truncf %235 : vector<10x32xf32> to vector<10x32xbf16>
    %c1_77 = arith.constant 1 : index
    %c0_78 = arith.constant 0 : index
    %c0_79 = arith.constant 0 : index
    %247 = vector.load %arg6[%c1_77, %c0_78, %c0_79] : memref<2x32x96xbf16, #tpu.memory_space<vmem>>, vector<1x32x96xbf16>
    %248 = vector.shape_cast %247 : vector<1x32x96xbf16> to vector<32x96xbf16>
    %cst_80 = arith.constant dense<0.000000e+00> : vector<10x96xf32>
    %249 = tpu.matmul %246, %248, %cst_80 {dimension_numbers = #tpu.dot_dimension_numbers<[1], [0], [0], [1], [0, 0, 1, 1], [], []>} : vector<10x32xbf16>, vector<32x96xbf16>, vector<10x96xf32> -> vector<10x96xf32>
    %250 = vector.broadcast %238 : vector<1x96xf32> to vector<10x96xf32>
    %251 = arith.addf %249, %250 : vector<10x96xf32>
    %252 = vector.extract_strided_slice %251 {offsets = [0, 0], sizes = [10, 32], strides = [1, 1]} : vector<10x96xf32> to vector<10x32xf32>
    %253 = vector.extract_strided_slice %251 {offsets = [0, 32], sizes = [10, 32], strides = [1, 1]} : vector<10x96xf32> to vector<10x32xf32>
    %254 = vector.extract_strided_slice %251 {offsets = [0, 64], sizes = [10, 32], strides = [1, 1]} : vector<10x96xf32> to vector<10x32xf32>
    %255 = vector.extract_strided_slice %252 {offsets = [0, 0], sizes = [10, 8], strides = [1, 1]} : vector<10x32xf32> to vector<10x8xf32>
    %256 = arith.truncf %255 : vector<10x8xf32> to vector<10x8xbf16>
    %257 = vector.extract_strided_slice %253 {offsets = [0, 0], sizes = [10, 8], strides = [1, 1]} : vector<10x32xf32> to vector<10x8xf32>
    %258 = arith.truncf %257 : vector<10x8xf32> to vector<10x8xbf16>
    %cst_81 = arith.constant dense<0.000000e+00> : vector<10x10xf32>
    %259 = tpu.matmul %256, %258, %cst_81 {dimension_numbers = #tpu.dot_dimension_numbers<[1], [1], [0], [0], [0, 0, 1, 0], [], []>} : vector<10x8xbf16>, vector<10x8xbf16>, vector<10x10xf32> -> vector<10x10xf32>
    %cst_82 = arith.constant 0.353553385 : f32
    %260 = vector.broadcast %cst_82 : f32 to vector<10x10xf32>
    %261 = arith.mulf %259, %260 : vector<10x10xf32>
    %262 = arith.addf %261, %0 : vector<10x10xf32>
    %cst_83 = arith.constant dense<0xFF800000> : vector<10xf32>
    %263 = vector.multi_reduction <maximumf>, %262, %cst_83 [1] : vector<10x10xf32> to vector<10xf32>
    %264 = vector.shape_cast %263 : vector<10xf32> to vector<10x1xf32>
    %265 = vector.broadcast %264 : vector<10x1xf32> to vector<10x10xf32>
    %266 = arith.subf %262, %265 : vector<10x10xf32>
    %267 = math.exp %266 : vector<10x10xf32>
    %cst_84 = arith.constant dense<0.000000e+00> : vector<10xf32>
    %268 = vector.multi_reduction <add>, %267, %cst_84 [1] : vector<10x10xf32> to vector<10xf32>
    %269 = vector.shape_cast %268 : vector<10xf32> to vector<10x1xf32>
    %270 = tpu.reciprocal %269 {approx = true} : vector<10x1xf32> -> vector<10x1xf32>
    %271 = vector.broadcast %270 : vector<10x1xf32> to vector<10x10xf32>
    %272 = arith.mulf %267, %271 : vector<10x10xf32>
    %273 = arith.truncf %272 : vector<10x10xf32> to vector<10x10xbf16>
    %274 = vector.extract_strided_slice %254 {offsets = [0, 0], sizes = [10, 8], strides = [1, 1]} : vector<10x32xf32> to vector<10x8xf32>
    %275 = arith.truncf %274 : vector<10x8xf32> to vector<10x8xbf16>
    %cst_85 = arith.constant dense<0.000000e+00> : vector<10x8xf32>
    %276 = tpu.matmul %273, %275, %cst_85 {dimension_numbers = #tpu.dot_dimension_numbers<[1], [0], [0], [1], [0, 0, 1, 1], [], []>} : vector<10x10xbf16>, vector<10x8xbf16>, vector<10x8xf32> -> vector<10x8xf32>
    %277 = vector.extract_strided_slice %252 {offsets = [0, 8], sizes = [10, 8], strides = [1, 1]} : vector<10x32xf32> to vector<10x8xf32>
    %278 = arith.truncf %277 : vector<10x8xf32> to vector<10x8xbf16>
    %279 = vector.extract_strided_slice %253 {offsets = [0, 8], sizes = [10, 8], strides = [1, 1]} : vector<10x32xf32> to vector<10x8xf32>
    %280 = arith.truncf %279 : vector<10x8xf32> to vector<10x8xbf16>
    %cst_86 = arith.constant dense<0.000000e+00> : vector<10x10xf32>
    %281 = tpu.matmul %278, %280, %cst_86 {dimension_numbers = #tpu.dot_dimension_numbers<[1], [1], [0], [0], [0, 0, 1, 0], [], []>} : vector<10x8xbf16>, vector<10x8xbf16>, vector<10x10xf32> -> vector<10x10xf32>
    %cst_87 = arith.constant 0.353553385 : f32
    %282 = vector.broadcast %cst_87 : f32 to vector<10x10xf32>
    %283 = arith.mulf %281, %282 : vector<10x10xf32>
    %284 = arith.addf %283, %0 : vector<10x10xf32>
    %cst_88 = arith.constant dense<0xFF800000> : vector<10xf32>
    %285 = vector.multi_reduction <maximumf>, %284, %cst_88 [1] : vector<10x10xf32> to vector<10xf32>
    %286 = vector.shape_cast %285 : vector<10xf32> to vector<10x1xf32>
    %287 = vector.broadcast %286 : vector<10x1xf32> to vector<10x10xf32>
    %288 = arith.subf %284, %287 : vector<10x10xf32>
    %289 = math.exp %288 : vector<10x10xf32>
    %cst_89 = arith.constant dense<0.000000e+00> : vector<10xf32>
    %290 = vector.multi_reduction <add>, %289, %cst_89 [1] : vector<10x10xf32> to vector<10xf32>
    %291 = vector.shape_cast %290 : vector<10xf32> to vector<10x1xf32>
    %292 = tpu.reciprocal %291 {approx = true} : vector<10x1xf32> -> vector<10x1xf32>
    %293 = vector.broadcast %292 : vector<10x1xf32> to vector<10x10xf32>
    %294 = arith.mulf %289, %293 : vector<10x10xf32>
    %295 = arith.truncf %294 : vector<10x10xf32> to vector<10x10xbf16>
    %296 = vector.extract_strided_slice %254 {offsets = [0, 8], sizes = [10, 8], strides = [1, 1]} : vector<10x32xf32> to vector<10x8xf32>
    %297 = arith.truncf %296 : vector<10x8xf32> to vector<10x8xbf16>
    %cst_90 = arith.constant dense<0.000000e+00> : vector<10x8xf32>
    %298 = tpu.matmul %295, %297, %cst_90 {dimension_numbers = #tpu.dot_dimension_numbers<[1], [0], [0], [1], [0, 0, 1, 1], [], []>} : vector<10x10xbf16>, vector<10x8xbf16>, vector<10x8xf32> -> vector<10x8xf32>
    %299 = vector.extract_strided_slice %252 {offsets = [0, 16], sizes = [10, 8], strides = [1, 1]} : vector<10x32xf32> to vector<10x8xf32>
    %300 = arith.truncf %299 : vector<10x8xf32> to vector<10x8xbf16>
    %301 = vector.extract_strided_slice %253 {offsets = [0, 16], sizes = [10, 8], strides = [1, 1]} : vector<10x32xf32> to vector<10x8xf32>
    %302 = arith.truncf %301 : vector<10x8xf32> to vector<10x8xbf16>
    %cst_91 = arith.constant dense<0.000000e+00> : vector<10x10xf32>
    %303 = tpu.matmul %300, %302, %cst_91 {dimension_numbers = #tpu.dot_dimension_numbers<[1], [1], [0], [0], [0, 0, 1, 0], [], []>} : vector<10x8xbf16>, vector<10x8xbf16>, vector<10x10xf32> -> vector<10x10xf32>
    %cst_92 = arith.constant 0.353553385 : f32
    %304 = vector.broadcast %cst_92 : f32 to vector<10x10xf32>
    %305 = arith.mulf %303, %304 : vector<10x10xf32>
    %306 = arith.addf %305, %0 : vector<10x10xf32>
    %cst_93 = arith.constant dense<0xFF800000> : vector<10xf32>
    %307 = vector.multi_reduction <maximumf>, %306, %cst_93 [1] : vector<10x10xf32> to vector<10xf32>
    %308 = vector.shape_cast %307 : vector<10xf32> to vector<10x1xf32>
    %309 = vector.broadcast %308 : vector<10x1xf32> to vector<10x10xf32>
    %310 = arith.subf %306, %309 : vector<10x10xf32>
    %311 = math.exp %310 : vector<10x10xf32>
    %cst_94 = arith.constant dense<0.000000e+00> : vector<10xf32>
    %312 = vector.multi_reduction <add>, %311, %cst_94 [1] : vector<10x10xf32> to vector<10xf32>
    %313 = vector.shape_cast %312 : vector<10xf32> to vector<10x1xf32>
    %314 = tpu.reciprocal %313 {approx = true} : vector<10x1xf32> -> vector<10x1xf32>
    %315 = vector.broadcast %314 : vector<10x1xf32> to vector<10x10xf32>
    %316 = arith.mulf %311, %315 : vector<10x10xf32>
    %317 = arith.truncf %316 : vector<10x10xf32> to vector<10x10xbf16>
    %318 = vector.extract_strided_slice %254 {offsets = [0, 16], sizes = [10, 8], strides = [1, 1]} : vector<10x32xf32> to vector<10x8xf32>
    %319 = arith.truncf %318 : vector<10x8xf32> to vector<10x8xbf16>
    %cst_95 = arith.constant dense<0.000000e+00> : vector<10x8xf32>
    %320 = tpu.matmul %317, %319, %cst_95 {dimension_numbers = #tpu.dot_dimension_numbers<[1], [0], [0], [1], [0, 0, 1, 1], [], []>} : vector<10x10xbf16>, vector<10x8xbf16>, vector<10x8xf32> -> vector<10x8xf32>
    %321 = vector.extract_strided_slice %252 {offsets = [0, 24], sizes = [10, 8], strides = [1, 1]} : vector<10x32xf32> to vector<10x8xf32>
    %322 = arith.truncf %321 : vector<10x8xf32> to vector<10x8xbf16>
    %323 = vector.extract_strided_slice %253 {offsets = [0, 24], sizes = [10, 8], strides = [1, 1]} : vector<10x32xf32> to vector<10x8xf32>
    %324 = arith.truncf %323 : vector<10x8xf32> to vector<10x8xbf16>
    %cst_96 = arith.constant dense<0.000000e+00> : vector<10x10xf32>
    %325 = tpu.matmul %322, %324, %cst_96 {dimension_numbers = #tpu.dot_dimension_numbers<[1], [1], [0], [0], [0, 0, 1, 0], [], []>} : vector<10x8xbf16>, vector<10x8xbf16>, vector<10x10xf32> -> vector<10x10xf32>
    %cst_97 = arith.constant 0.353553385 : f32
    %326 = vector.broadcast %cst_97 : f32 to vector<10x10xf32>
    %327 = arith.mulf %325, %326 : vector<10x10xf32>
    %328 = arith.addf %327, %0 : vector<10x10xf32>
    %cst_98 = arith.constant dense<0xFF800000> : vector<10xf32>
    %329 = vector.multi_reduction <maximumf>, %328, %cst_98 [1] : vector<10x10xf32> to vector<10xf32>
    %330 = vector.shape_cast %329 : vector<10xf32> to vector<10x1xf32>
    %331 = vector.broadcast %330 : vector<10x1xf32> to vector<10x10xf32>
    %332 = arith.subf %328, %331 : vector<10x10xf32>
    %333 = math.exp %332 : vector<10x10xf32>
    %cst_99 = arith.constant dense<0.000000e+00> : vector<10xf32>
    %334 = vector.multi_reduction <add>, %333, %cst_99 [1] : vector<10x10xf32> to vector<10xf32>
    %335 = vector.shape_cast %334 : vector<10xf32> to vector<10x1xf32>
    %336 = tpu.reciprocal %335 {approx = true} : vector<10x1xf32> -> vector<10x1xf32>
    %337 = vector.broadcast %336 : vector<10x1xf32> to vector<10x10xf32>
    %338 = arith.mulf %333, %337 : vector<10x10xf32>
    %339 = arith.truncf %338 : vector<10x10xf32> to vector<10x10xbf16>
    %340 = vector.extract_strided_slice %254 {offsets = [0, 24], sizes = [10, 8], strides = [1, 1]} : vector<10x32xf32> to vector<10x8xf32>
    %341 = arith.truncf %340 : vector<10x8xf32> to vector<10x8xbf16>
    %cst_100 = arith.constant dense<0.000000e+00> : vector<10x8xf32>
    %342 = tpu.matmul %339, %341, %cst_100 {dimension_numbers = #tpu.dot_dimension_numbers<[1], [0], [0], [1], [0, 0, 1, 1], [], []>} : vector<10x10xbf16>, vector<10x8xbf16>, vector<10x8xf32> -> vector<10x8xf32>
    %343 = tpu.concatenate %276, %298, %320, %342 in 1 : vector<10x8xf32>, vector<10x8xf32>, vector<10x8xf32>, vector<10x8xf32> -> vector<10x32xf32>
    %344 = arith.truncf %343 : vector<10x32xf32> to vector<10x32xbf16>
    %c1_101 = arith.constant 1 : index
    %c0_102 = arith.constant 0 : index
    %c0_103 = arith.constant 0 : index
    %345 = vector.load %arg7[%c1_101, %c0_102, %c0_103] : memref<2x32x32xbf16, #tpu.memory_space<vmem>>, vector<1x32x32xbf16>
    %346 = vector.shape_cast %345 : vector<1x32x32xbf16> to vector<32x32xbf16>
    %cst_104 = arith.constant dense<0.000000e+00> : vector<10x32xf32>
    %347 = tpu.matmul %344, %346, %cst_104 {dimension_numbers = #tpu.dot_dimension_numbers<[1], [0], [0], [1], [0, 0, 1, 1], [], []>} : vector<10x32xbf16>, vector<32x32xbf16>, vector<10x32xf32> -> vector<10x32xf32>
    %348 = vector.broadcast %239 : vector<1x32xf32> to vector<10x32xf32>
    %349 = arith.addf %347, %348 : vector<10x32xf32>
    %350 = arith.addf %235, %349 : vector<10x32xf32>
    %cst_105 = arith.constant dense<0.000000e+00> : vector<10xf32>
    %351 = vector.multi_reduction <add>, %350, %cst_105 [1] : vector<10x32xf32> to vector<10xf32>
    %352 = vector.shape_cast %351 : vector<10xf32> to vector<10x1xf32>
    %cst_106 = arith.constant 3.200000e+01 : f32
    %353 = vector.broadcast %cst_106 : f32 to vector<10x1xf32>
    %354 = arith.divf %352, %353 : vector<10x1xf32>
    %355 = vector.broadcast %354 : vector<10x1xf32> to vector<10x32xf32>
    %356 = arith.subf %350, %355 : vector<10x32xf32>
    %357 = arith.mulf %356, %356 : vector<10x32xf32>
    %cst_107 = arith.constant dense<0.000000e+00> : vector<10xf32>
    %358 = vector.multi_reduction <add>, %357, %cst_107 [1] : vector<10x32xf32> to vector<10xf32>
    %359 = vector.shape_cast %358 : vector<10xf32> to vector<10x1xf32>
    %cst_108 = arith.constant 3.200000e+01 : f32
    %360 = vector.broadcast %cst_108 : f32 to vector<10x1xf32>
    %361 = arith.divf %359, %360 : vector<10x1xf32>
    %362 = vector.broadcast %354 : vector<10x1xf32> to vector<10x32xf32>
    %363 = arith.subf %350, %362 : vector<10x32xf32>
    %cst_109 = arith.constant 9.99999974E-6 : f32
    %364 = vector.broadcast %cst_109 : f32 to vector<10x1xf32>
    %365 = arith.addf %361, %364 : vector<10x1xf32>
    %366 = math.rsqrt %365 : vector<10x1xf32>
    %367 = vector.broadcast %366 : vector<10x1xf32> to vector<10x32xf32>
    %368 = arith.mulf %363, %367 : vector<10x32xf32>
    %369 = vector.broadcast %242 : vector<1x32xf32> to vector<10x32xf32>
    %370 = arith.mulf %368, %369 : vector<10x32xf32>
    %371 = vector.broadcast %243 : vector<1x32xf32> to vector<10x32xf32>
    %372 = arith.addf %370, %371 : vector<10x32xf32>
    %373 = arith.truncf %372 : vector<10x32xf32> to vector<10x32xbf16>
    %c1_110 = arith.constant 1 : index
    %c0_111 = arith.constant 0 : index
    %c0_112 = arith.constant 0 : index
    %374 = vector.load %arg8[%c1_110, %c0_111, %c0_112] : memref<2x32x64xbf16, #tpu.memory_space<vmem>>, vector<1x32x64xbf16>
    %375 = vector.shape_cast %374 : vector<1x32x64xbf16> to vector<32x64xbf16>
    %cst_113 = arith.constant dense<0.000000e+00> : vector<10x64xf32>
    %376 = tpu.matmul %373, %375, %cst_113 {dimension_numbers = #tpu.dot_dimension_numbers<[1], [0], [0], [1], [0, 0, 1, 1], [], []>} : vector<10x32xbf16>, vector<32x64xbf16>, vector<10x64xf32> -> vector<10x64xf32>
    %377 = vector.broadcast %240 : vector<1x64xf32> to vector<10x64xf32>
    %378 = arith.addf %376, %377 : vector<10x64xf32>
    %cst_114 = arith.constant 5.000000e-01 : f32
    %379 = vector.broadcast %cst_114 : f32 to vector<10x64xf32>
    %380 = arith.mulf %379, %378 : vector<10x64xf32>
    %cst_115 = arith.constant 0.707106769 : f32
    %381 = vector.broadcast %cst_115 : f32 to vector<10x64xf32>
    %382 = arith.mulf %378, %381 : vector<10x64xf32>
    %383 = math.absf %382 : vector<10x64xf32>
    %cst_116 = arith.constant 5.000000e-01 : f32
    %384 = vector.broadcast %cst_116 : f32 to vector<10x64xf32>
    %385 = arith.mulf %384, %383 : vector<10x64xf32>
    %cst_117 = arith.constant 1.000000e+00 : f32
    %386 = vector.broadcast %cst_117 : f32 to vector<10x64xf32>
    %387 = arith.addf %386, %385 : vector<10x64xf32>
    %388 = tpu.reciprocal %387 : vector<10x64xf32> -> vector<10x64xf32>
    %389 = arith.mulf %388, %388 : vector<10x64xf32>
    %390 = arith.mulf %389, %389 : vector<10x64xf32>
    %391 = arith.mulf %390, %390 : vector<10x64xf32>
    %cst_118 = arith.constant 1.00002372 : f32
    %392 = vector.broadcast %cst_118 : f32 to vector<10x64xf32>
    %393 = arith.mulf %392, %388 : vector<10x64xf32>
    %cst_119 = arith.constant -1.26551223 : f32
    %394 = vector.broadcast %cst_119 : f32 to vector<10x64xf32>
    %395 = arith.addf %394, %393 : vector<10x64xf32>
    %cst_120 = arith.constant 0.0967841818 : f32
    %396 = vector.broadcast %cst_120 : f32 to vector<10x64xf32>
    %397 = arith.mulf %396, %388 : vector<10x64xf32>
    %cst_121 = arith.constant 0.374091953 : f32
    %398 = vector.broadcast %cst_121 : f32 to vector<10x64xf32>
    %399 = arith.addf %398, %397 : vector<10x64xf32>
    %cst_122 = arith.constant 0.278868079 : f32
    %400 = vector.broadcast %cst_122 : f32 to vector<10x64xf32>
    %401 = arith.mulf %400, %388 : vector<10x64xf32>
    %cst_123 = arith.constant -0.186288059 : f32
    %402 = vector.broadcast %cst_123 : f32 to vector<10x64xf32>
    %403 = arith.addf %402, %401 : vector<10x64xf32>
    %cst_124 = arith.constant 1.48851585 : f32
    %404 = vector.broadcast %cst_124 : f32 to vector<10x64xf32>
    %405 = arith.mulf %404, %388 : vector<10x64xf32>
    %cst_125 = arith.constant -1.13520396 : f32
    %406 = vector.broadcast %cst_125 : f32 to vector<10x64xf32>
    %407 = arith.addf %406, %405 : vector<10x64xf32>
    %cst_126 = arith.constant 0.170872763 : f32
    %408 = vector.broadcast %cst_126 : f32 to vector<10x64xf32>
    %409 = arith.mulf %408, %388 : vector<10x64xf32>
    %cst_127 = arith.constant -0.822152256 : f32
    %410 = vector.broadcast %cst_127 : f32 to vector<10x64xf32>
    %411 = arith.addf %410, %409 : vector<10x64xf32>
    %412 = arith.mulf %399, %389 : vector<10x64xf32>
    %413 = arith.addf %395, %412 : vector<10x64xf32>
    %414 = arith.mulf %407, %389 : vector<10x64xf32>
    %415 = arith.addf %403, %414 : vector<10x64xf32>
    %416 = arith.mulf %415, %390 : vector<10x64xf32>
    %417 = arith.addf %413, %416 : vector<10x64xf32>
    %418 = arith.mulf %411, %391 : vector<10x64xf32>
    %419 = arith.addf %417, %418 : vector<10x64xf32>
    %cst_128 = arith.constant 0.000000e+00 : f32
    %420 = vector.broadcast %cst_128 : f32 to vector<10x64xf32>
    %421 = arith.subf %420, %383 : vector<10x64xf32>
    %422 = arith.mulf %421, %383 : vector<10x64xf32>
    %423 = arith.addf %422, %419 : vector<10x64xf32>
    %424 = math.exp %423 : vector<10x64xf32>
    %425 = arith.mulf %388, %424 : vector<10x64xf32>
    %cst_129 = arith.constant 0.000000e+00 : f32
    %426 = vector.broadcast %cst_129 : f32 to vector<10x64xf32>
    %427 = arith.cmpf oge, %382, %426 : vector<10x64xf32>
    %cst_130 = arith.constant 1.000000e+00 : f32
    %428 = vector.broadcast %cst_130 : f32 to vector<10x64xf32>
    %429 = arith.subf %428, %425 : vector<10x64xf32>
    %cst_131 = arith.constant 1.000000e+00 : f32
    %430 = vector.broadcast %cst_131 : f32 to vector<10x64xf32>
    %431 = arith.subf %425, %430 : vector<10x64xf32>
    %432 = arith.select %427, %429, %431 : vector<10x64xi1>, vector<10x64xf32>
    %cst_132 = arith.constant 1.000000e+00 : f32
    %433 = vector.broadcast %cst_132 : f32 to vector<10x64xf32>
    %434 = arith.addf %433, %432 : vector<10x64xf32>
    %435 = arith.mulf %380, %434 : vector<10x64xf32>
    %436 = arith.truncf %435 : vector<10x64xf32> to vector<10x64xbf16>
    %c1_133 = arith.constant 1 : index
    %c0_134 = arith.constant 0 : index
    %c0_135 = arith.constant 0 : index
    %437 = vector.load %arg9[%c1_133, %c0_134, %c0_135] : memref<2x64x32xbf16, #tpu.memory_space<vmem>>, vector<1x64x32xbf16>
    %438 = vector.shape_cast %437 : vector<1x64x32xbf16> to vector<64x32xbf16>
    %cst_136 = arith.constant dense<0.000000e+00> : vector<10x32xf32>
    %439 = tpu.matmul %436, %438, %cst_136 {dimension_numbers = #tpu.dot_dimension_numbers<[1], [0], [0], [1], [0, 0, 1, 1], [], []>} : vector<10x64xbf16>, vector<64x32xbf16>, vector<10x32xf32> -> vector<10x32xf32>
    %440 = vector.broadcast %241 : vector<1x32xf32> to vector<10x32xf32>
    %441 = arith.addf %439, %440 : vector<10x32xf32>
    %442 = arith.addf %372, %441 : vector<10x32xf32>
    %cst_137 = arith.constant dense<0.000000e+00> : vector<10xf32>
    %443 = vector.multi_reduction <add>, %442, %cst_137 [1] : vector<10x32xf32> to vector<10xf32>
    %444 = vector.shape_cast %443 : vector<10xf32> to vector<10x1xf32>
    %cst_138 = arith.constant 3.200000e+01 : f32
    %445 = vector.broadcast %cst_138 : f32 to vector<10x1xf32>
    %446 = arith.divf %444, %445 : vector<10x1xf32>
    %447 = vector.broadcast %446 : vector<10x1xf32> to vector<10x32xf32>
    %448 = arith.subf %442, %447 : vector<10x32xf32>
    %449 = arith.mulf %448, %448 : vector<10x32xf32>
    %cst_139 = arith.constant dense<0.000000e+00> : vector<10xf32>
    %450 = vector.multi_reduction <add>, %449, %cst_139 [1] : vector<10x32xf32> to vector<10xf32>
    %451 = vector.shape_cast %450 : vector<10xf32> to vector<10x1xf32>
    %cst_140 = arith.constant 3.200000e+01 : f32
    %452 = vector.broadcast %cst_140 : f32 to vector<10x1xf32>
    %453 = arith.divf %451, %452 : vector<10x1xf32>
    %454 = vector.broadcast %446 : vector<10x1xf32> to vector<10x32xf32>
    %455 = arith.subf %442, %454 : vector<10x32xf32>
    %cst_141 = arith.constant 9.99999974E-6 : f32
    %456 = vector.broadcast %cst_141 : f32 to vector<10x1xf32>
    %457 = arith.addf %453, %456 : vector<10x1xf32>
    %458 = math.rsqrt %457 : vector<10x1xf32>
    %459 = vector.broadcast %458 : vector<10x1xf32> to vector<10x32xf32>
    %460 = arith.mulf %455, %459 : vector<10x32xf32>
    %461 = vector.broadcast %244 : vector<1x32xf32> to vector<10x32xf32>
    %462 = arith.mulf %460, %461 : vector<10x32xf32>
    %463 = vector.broadcast %245 : vector<1x32xf32> to vector<10x32xf32>
    %464 = arith.addf %462, %463 : vector<10x32xf32>
    %c0_142 = arith.constant 0 : index
    %c0_143 = arith.constant 0 : index
    %465 = vector.load %arg12[%c0_142, %c0_143] : memref<8x128xf32, #tpu.memory_space<vmem>>, vector<8x128xf32>
    %466 = vector.extract_strided_slice %465 {offsets = [0, 0], sizes = [1, 32], strides = [1, 1]} : vector<8x128xf32> to vector<1x32xf32>
    %467 = vector.extract_strided_slice %465 {offsets = [1, 0], sizes = [1, 32], strides = [1, 1]} : vector<8x128xf32> to vector<1x32xf32>
    %468 = vector.extract_strided_slice %465 {offsets = [2, 0], sizes = [1, 128], strides = [1, 1]} : vector<8x128xf32> to vector<1x128xf32>
    %c0_144 = arith.constant 0 : index
    %c0_145 = arith.constant 0 : index
    %469 = vector.load %arg4[%c0_144, %c0_145] : memref<2x10xf32, #tpu.memory_space<vmem>>, vector<2x10xf32>
    %cst_146 = arith.constant dense<0.000000e+00> : vector<2x32xf32>
    %470 = tpu.matmul %469, %464, %cst_146 {dimension_numbers = #tpu.dot_dimension_numbers<[1], [0], [0], [1], [0, 0, 1, 1], [], []>} : vector<2x10xf32>, vector<10x32xf32>, vector<2x32xf32> -> vector<2x32xf32>
    %cst_147 = arith.constant dense<0.000000e+00> : vector<2xf32>
    %471 = vector.multi_reduction <add>, %470, %cst_147 [1] : vector<2x32xf32> to vector<2xf32>
    %472 = vector.shape_cast %471 : vector<2xf32> to vector<2x1xf32>
    %cst_148 = arith.constant 3.200000e+01 : f32
    %473 = vector.broadcast %cst_148 : f32 to vector<2x1xf32>
    %474 = arith.divf %472, %473 : vector<2x1xf32>
    %475 = vector.broadcast %474 : vector<2x1xf32> to vector<2x32xf32>
    %476 = arith.subf %470, %475 : vector<2x32xf32>
    %477 = arith.mulf %476, %476 : vector<2x32xf32>
    %cst_149 = arith.constant dense<0.000000e+00> : vector<2xf32>
    %478 = vector.multi_reduction <add>, %477, %cst_149 [1] : vector<2x32xf32> to vector<2xf32>
    %479 = vector.shape_cast %478 : vector<2xf32> to vector<2x1xf32>
    %cst_150 = arith.constant 3.200000e+01 : f32
    %480 = vector.broadcast %cst_150 : f32 to vector<2x1xf32>
    %481 = arith.divf %479, %480 : vector<2x1xf32>
    %482 = vector.broadcast %474 : vector<2x1xf32> to vector<2x32xf32>
    %483 = arith.subf %470, %482 : vector<2x32xf32>
    %cst_151 = arith.constant 9.99999974E-6 : f32
    %484 = vector.broadcast %cst_151 : f32 to vector<2x1xf32>
    %485 = arith.addf %481, %484 : vector<2x1xf32>
    %486 = math.rsqrt %485 : vector<2x1xf32>
    %487 = vector.broadcast %486 : vector<2x1xf32> to vector<2x32xf32>
    %488 = arith.mulf %483, %487 : vector<2x32xf32>
    %489 = vector.broadcast %466 : vector<1x32xf32> to vector<2x32xf32>
    %490 = arith.mulf %488, %489 : vector<2x32xf32>
    %491 = vector.broadcast %467 : vector<1x32xf32> to vector<2x32xf32>
    %492 = arith.addf %490, %491 : vector<2x32xf32>
    %493 = arith.truncf %492 : vector<2x32xf32> to vector<2x32xbf16>
    %c0_152 = arith.constant 0 : index
    %c0_153 = arith.constant 0 : index
    %494 = vector.load %arg11[%c0_152, %c0_153] : memref<32x128xbf16, #tpu.memory_space<vmem>>, vector<32x128xbf16>
    %cst_154 = arith.constant dense<0.000000e+00> : vector<2x128xf32>
    %495 = tpu.matmul %493, %494, %cst_154 {dimension_numbers = #tpu.dot_dimension_numbers<[1], [0], [0], [1], [0, 0, 1, 1], [], []>} : vector<2x32xbf16>, vector<32x128xbf16>, vector<2x128xf32> -> vector<2x128xf32>
    %496 = vector.broadcast %468 : vector<1x128xf32> to vector<2x128xf32>
    %497 = arith.addf %495, %496 : vector<2x128xf32>
    %c0_155 = arith.constant 0 : index
    %c0_156 = arith.constant 0 : index
    %498 = vector.load %arg13[%c0_155, %c0_156] : memref<2x128xf32, #tpu.memory_space<vmem>>, vector<2x128xf32>
    tpu.vector_store %arg13[%c0_155, %c0_156], %497 {strides = array<i32>} : memref<2x128xf32, #tpu.memory_space<vmem>>, vector<2x128xf32>,
    return
  }
  func.func @transform_0(%arg0: i32) -> (i32, i32) {
    %c0_i32 = arith.constant 0 : i32
    %c0_i32_0 = arith.constant 0 : i32
    return %arg0, %c0_i32 : i32, i32
  }
  func.func @transform_1(%arg0: i32) -> (i32, i32) {
    %c0_i32 = arith.constant 0 : i32
    %c0_i32_0 = arith.constant 0 : i32
    %c0_i32_1 = arith.constant 0 : i32
    return %c0_i32, %c0_i32_0 : i32, i32
  }
  func.func @transform_2(%arg0: i32) -> (i32, i32) {
    %c0_i32 = arith.constant 0 : i32
    %c0_i32_0 = arith.constant 0 : i32
    %c0_i32_1 = arith.constant 0 : i32
    return %c0_i32, %c0_i32_0 : i32, i32
  }
  func.func @transform_3(%arg0: i32) -> (i32, i32) {
    %c0_i32 = arith.constant 0 : i32
    %c0_i32_0 = arith.constant 0 : i32
    %c0_i32_1 = arith.constant 0 : i32
    return %c0_i32, %c0_i32_0 : i32, i32
  }
  func.func @transform_4(%arg0: i32) -> (i32, i32) {
    %c0_i32 = arith.constant 0 : i32
    %c0_i32_0 = arith.constant 0 : i32
    %c0_i32_1 = arith.constant 0 : i32
    return %c0_i32, %c0_i32_0 : i32, i32
  }
  func.func @transform_5(%arg0: i32) -> (i32, i32, i32) {
    %c0_i32 = arith.constant 0 : i32
    %c0_i32_0 = arith.constant 0 : i32
    %c0_i32_1 = arith.constant 0 : i32
    %c0_i32_2 = arith.constant 0 : i32
    return %c0_i32, %c0_i32_0, %c0_i32_1 : i32, i32, i32
  }
  func.func @transform_6(%arg0: i32) -> (i32, i32, i32) {
    %c0_i32 = arith.constant 0 : i32
    %c0_i32_0 = arith.constant 0 : i32
    %c0_i32_1 = arith.constant 0 : i32
    %c0_i32_2 = arith.constant 0 : i32
    return %c0_i32, %c0_i32_0, %c0_i32_1 : i32, i32, i32
  }
  func.func @transform_7(%arg0: i32) -> (i32, i32, i32) {
    %c0_i32 = arith.constant 0 : i32
    %c0_i32_0 = arith.constant 0 : i32
    %c0_i32_1 = arith.constant 0 : i32
    %c0_i32_2 = arith.constant 0 : i32
    return %c0_i32, %c0_i32_0, %c0_i32_1 : i32, i32, i32
  }
  func.func @transform_8(%arg0: i32) -> (i32, i32, i32) {
    %c0_i32 = arith.constant 0 : i32
    %c0_i32_0 = arith.constant 0 : i32
    %c0_i32_1 = arith.constant 0 : i32
    %c0_i32_2 = arith.constant 0 : i32
    return %c0_i32, %c0_i32_0, %c0_i32_1 : i32, i32, i32
  }
  func.func @transform_9(%arg0: i32) -> (i32, i32, i32) {
    %c0_i32 = arith.constant 0 : i32
    %c0_i32_0 = arith.constant 0 : i32
    %c0_i32_1 = arith.constant 0 : i32
    %c0_i32_2 = arith.constant 0 : i32
    return %c0_i32, %c0_i32_0, %c0_i32_1 : i32, i32, i32
  }
  func.func @transform_10(%arg0: i32) -> (i32, i32) {
    %c0_i32 = arith.constant 0 : i32
    %c0_i32_0 = arith.constant 0 : i32
    %c0_i32_1 = arith.constant 0 : i32
    return %c0_i32, %c0_i32_0 : i32, i32
  }
  func.func @transform_11(%arg0: i32) -> (i32, i32) {
    %c0_i32 = arith.constant 0 : i32
    %c0_i32_0 = arith.constant 0 : i32
    %c0_i32_1 = arith.constant 0 : i32
    return %c0_i32, %c0_i32_0 : i32, i32
  }
  func.func @transform_12(%arg0: i32) -> (i32, i32) {
    %c0_i32 = arith.constant 0 : i32
    %c0_i32_0 = arith.constant 0 : i32
    return %arg0, %c0_i32 : i32, i32
  }
}

</mosaic_0001>

<bundles_post_ra>
// kernel: tile.9
= control target key start
LH: loop header
LB: loop body
LE: loop exit
PB: predicated region body
PF: predicated region fallthrough
CT: control target
= control target key end

     0   :  { %vm3_vm0 = vcmask 261120   ;;  %s34_s0 = inlined_call_operand.vmem [shape: f32[2,5,32], index: 0, kind: input, shape index: {}]   ;;  %s35_s1 = inlined_call_operand.vmem [shape: f32[10,32], index: 1, kind: output, shape index: {}]  }
   0x1   :  { %v2_v0 = vld [vmem:[%s34_s0] sm:$0x1f]   ;;  %v10_v1 = vld [vmem:[%s34_s0 + $0x8] sm:$0x1f]  }
   0x2   :  { %4 = vst.msk [vmem:[%s35_s1] sm:$0x1f] %vm3_vm0, %v2_v0   ;;  %11 = vst.msk [vmem:[%s35_s1 + $0x5] sm:$0x1f] %vm3_vm0, %v10_v1  }

// kernel: vit_forward.1
= control target key start
LH: loop header
LB: loop body
LE: loop exit
PB: predicated region body
PF: predicated region fallthrough
CT: control target
= control target key end

     0   :  { %v2816_v1 = vmov 0.0   ;;  %vm2817_vm0 = vmmov 0   ;;  %vm82_vm1 = vcmask 523264   ;;  %s3452_s0 = inlined_call_operand.vmem [shape: f32[10,64], index: 0, kind: input, shape index: {}]   ;;  %s3453_s1 = inlined_call_operand.vmem [shape: f32[10,32], index: 1, kind: input, shape index: {}]   ;;  %s3454_s2 = inlined_call_operand.vmem [shape: f32[10,10], index: 2, kind: input, shape index: {}]   ;;  %s3455_s3 = inlined_call_operand.vmem [shape: f32[2,10], index: 3, kind: input, shape index: {}]   ;;  %s3456_s4 = inlined_call_operand.vmem [shape: bf16[64,32], index: 4, kind: input, shape index: {}]   ;;  %s3457_s5 = inlined_call_operand.vmem [shape: bf16[2,32,96], index: 5, kind: input, shape index: {}]   ;;  %s3458_s6 = inlined_call_operand.vmem [shape: bf16[2,32,32], index: 6, kind: input, shape index: {}]   ;;  %s3459_s7 = inlined_call_operand.vmem [shape: bf16[2,32,64], index: 7, kind: input, shape index: {}]   ;;  %s3460_s8 = inlined_call_operand.vmem [shape: bf16[2,64,32], index: 8, kind: input, shape index: {}]   ;;  %s3461_s9 = inlined_call_operand.vmem [shape: f32[2,8,128], index: 9, kind: input, shape index: {}]   ;;  %s3462_s10 = inlined_call_operand.vmem [shape: bf16[32,128], index: 10, kind: input, shape index: {}]   ;;  %s3463_s11 = inlined_call_operand.vmem [shape: f32[8,128], index: 11, kind: input, shape index: {}]   ;;  %s3464_s12 = inlined_call_operand.hbm [shape: f32[2,128], index: 12, kind: output, shape index: {}]  }
   0x1   :  { %v2666_v0 = vld [vmem:[%s3456_s4] sm:$0xff]   ;;  %2418 = vmatprep.subr.bf16.mxu0 %v2816_v1  ;;  %2430 = vmatprep.subr.bf16.mxu1 %v2816_v1  ;;  %v2667_v2 = vld [vmem:[%s3456_s4 + $0x8] sm:$0xff]   ;;  %v2668_v3 = vld [vmem:[%s3456_s4 + $0x10] sm:$0xff]  }
   0x2   :  { %2419 = vmatpush3.bf16.msra.mxu0 %v2666_v0  ;;  %2426 = vmatprep.mubr.msk.bf16.mxu0 %vm2817_vm0, %v2816_v1  ;;  %v2669_v4 = vld [vmem:[%s3456_s4 + $0x18] sm:$0xff]   ;;  %v45_v5 = vld [vmem:[%s3452_s0] sm:$0xff]  ;;  %v46_v6 = vld [vmem:[%s3452_s0 + $0x8] sm:$0x3] }
   0x3   :  { %2420 = vmatprep.subr.bf16.mxu0 %v2816_v1  ;;  %2434 = vmatprep.mubr.msk.bf16.mxu1 %vm2817_vm0, %v2816_v1  ;;  %v47_v7 = vpack.c.bf16 %v46_v6, %v45_v5 }
   0x6   :  { %2421 = vmatpush3.bf16.msra.mxu0 %v2667_v2 }
   0x7   :  { %2422 = vmatprep.subr.bf16.mxu0 %v2816_v1 }
   0xa   :  { %2423 = vmatpush3.bf16.msra.mxu0 %v2668_v3 }
   0xb   :  { %2424 = vmatprep.subr.bf16.mxu0 %v2816_v1 }
   0xe   :  { %2425 = vmatpush3.bf16.msra.mxu0 %v2669_v4 }
   0xf   :  { %2444 = vmatprep.subr.bf16.mxu0 %v2816_v1 }
  0x11   :  { %2427 = vmatmul.mubr.msk.bf16.vlgmr.msra.gmra.mrb[0].mxu0 %vm82_vm1, %v47_v7 }
  0x12   :  { %2446 = vmatprep.mubr.msk.bf16.mxu0 %vm2817_vm0, %v2816_v1 }
  0x13   :  { %17 = vsyncpa [#allocation3], 0  ;;  %v2670_v8 = vld [vmem:[%s3457_s5] sm:$0xff]   ;;  %v2671_v9 = vld [vmem:[%s3457_s5 + $0x8] sm:$0xff]   ;;  %vm149_vm2 = vcmask 261120   ;;  %v133_v19 = vlaneseq  ;;  %s2818_s22 = smov 120  }
  0x14   :  { %2431 = vmatpush3.bf16.msra.mxu1 %v2670_v8  ;;  %v56_v10 = vld [vmem:[%s3453_s1] sm:$0xff]  ;;  %v57_v12 = vld [vmem:[%s3453_s1 + $0x8] sm:$0x3]  ;;  %s2819_s23 = smov 96   ;;  %s2820_s24 = smov 80   ;;  %vm198_vm3 = vcmask 64512  }
  0x15   :  { %2432 = vmatprep.subr.bf16.mxu1 %v2816_v1  ;;  %v2954_v20 = vshrl.u32 %v133_v19, 7  ;;  %v2962_v22 = vld [vmem:[%s3461_s9] sm:$0xff]  ;;  %s2821_s25 = smov 88   ;;  %s2822_s26 = smov 72   ;;  %vm250_vm4 = vcmask 80896   ;;  %vm254_vm5 = vcmask 74752  }
  0x16   :  { %s2823_s27 = smov 112   ;;  %s2824_s28 = smov 104   ;;  %v3006_v43 = vld [vmem:[%s3454_s2] sm:$0xff]  ;;  %v3011_v47 = vld [vmem:[%s3454_s2 + $0x8] sm:$0x3]  ;;  %vm280_vm6 = vcmask 1044480  }
  0x17   :  { %v2957_v21 = vsub.s32 0, %v2954_v20  ;;  %s2825_s4 = smov 56   ;;  %s2826_s15 = smov 64   ;;  %vm732_vm7 = vcmask 130048   ;;  %vm735_vm8 = vcmask 195584   ;;  %vm808_vm9 = vcmask 254976  }
  0x18   :  { %2433 = vmatpush3.bf16.msra.mxu1 %v2671_v9  ;;  %s2827_s0 = smov 48   ;;  %s2828_s16 = smov 40   ;;  %vm2092_vm14 = vcmask 1041408   ;;  %vm2833_vm15 = vmmov 1  }
  0x19   :  { %2438 = vmatprep.subr.bf16.mxu1 %v2816_v1  ;;  %v136_v23 = vrot.slane %v2962_v22, %v2957_v21  ;;  %s2829_s19 = smov 8   ;;  %s2830_s21 = smov 16  }
  0x1a   :  { %s2831_s29 = smov 24  }
  0xe4   :  { %v120_v11 = vpop.f32.mrb[0].mxu0 }
  0xe5   :  { %v2428_v13 = vpop.f32.mrb[1].mxu0  ;;  %v2945_v15 = vadd.f32 %v120_v11, %v56_v10 }
  0xe6   :  { %v123_v14 = vpop.f32.mrb[2].mxu0 }
  0xe7   :  { %v2947_v16 = vadd.f32 %v123_v14, %v57_v12  ;;  %v2429_v17 = vpop.f32.mrb[3].mxu0 }
  0xe9   :  { %v128_v18 = vpack.c.bf16 %v2947_v16, %v2945_v15 }
  0xeb   :  { %2435 = vmatmul.mubr.msk.bf16.vlgmr.msra.gmra.mrb[0].mxu1 %vm149_vm2, %v128_v18 }
  0xec   :  { %2440 = vmatprep.mubr.msk.bf16.mxu1 %vm2817_vm0, %v2816_v1 }
 0x1be   :  { %v187_v24 = vpop.f32.mrb[0].mxu1 }
 0x1bf   :  { %v2436_v25 = vpop.f32.mrb[1].mxu1  ;;  %v188_v27 = vadd.f32 %v187_v24, %v136_v23 }
 0x1c0   :  { %v190_v26 = vpop.f32.mrb[2].mxu1 }
 0x1c1   :  { %v191_v28 = vadd.f32 %v190_v26, %v136_v23  ;;  %v2437_v29 = vpop.f32.mrb[3].mxu1 }
 0x1c3   :  { %v2966_v30 = vpack.c.bf16 %v191_v28, %v188_v27 }
 0x1c5   :  { %325 = vrot.lane.b32.xlu1 %v2966_v30, %s2818_s22  ;;  %196 = vrot.lane.b32.xlu0 %v2966_v30, %s2819_s23 }
 0x1c9   :  { %454 = vrot.lane.b32.xlu1 %v2966_v30, %s2820_s24  ;;  %327 = vrot.lane.b32.xlu0 %v2966_v30, %s2821_s25 }
 0x1cd   :  { %581 = vrot.lane.b32.xlu1 %v2966_v30, %s2822_s26  ;;  %452 = vrot.lane.b32.xlu0 %v2966_v30, %s2823_s27 }
 0x1d1   :  { %579 = vrot.lane.b32.xlu0 %v2966_v30, %s2824_s28 }
 0x237   :  { %v197_v31 = vpop.permute.xlu0 %196  ;;  %v326_v34 = vpop.permute.xlu1 %325 }
 0x238   :  { %v203_v32 = vsel %vm198_vm3, %v197_v31, 0 }
 0x239   :  { %2439 = vmatpush3.bf16.xpose.msra.mxu1 %v203_v32 }
 0x23a   :  { %2450 = vmatprep.subr.bf16.mxu1 %v2816_v1 }
 0x23b   :  { %v328_v33 = vpop.permute.xlu0 %327  ;;  %v455_v36 = vpop.permute.xlu1 %454 }
 0x23c   :  { %v333_v35 = vsel %vm198_vm3, %v328_v33, 0  ;;  %v460_v37 = vsel %vm198_vm3, %v455_v36, 0 }
 0x23f   :  { %v582_v38 = vpop.permute.xlu1 %581  ;;  %v453_v39 = vpop.permute.xlu0 %452 }
 0x240   :  { %2441 = vmatmul.mubr.msk.bf16.vlgmr.msra.gmra.mrb[4].mxu1 %vm198_vm3, %v2966_v30  ;;  %v587_v40 = vsel %vm198_vm3, %v582_v38, 0 }
 0x241   :  { %2451 = vmatpush3.bf16.xpose.msra.mxu1 %v333_v35  ;;  %2452 = vmatprep.mubr.msk.bf16.mxu1 %vm2817_vm0, %v2816_v1 }
 0x242   :  { %2462 = vmatprep.subr.bf16.mxu1 %v2816_v1 }
 0x243   :  { %v580_v41 = vpop.permute.xlu0 %579 }
 0x248   :  { %2453 = vmatmul.mubr.msk.bf16.vlgmr.msra.gmra.mrb[8].mxu1 %vm198_vm3, %v326_v34 }
 0x249   :  { %2463 = vmatpush3.bf16.xpose.msra.mxu1 %v460_v37  ;;  %2464 = vmatprep.mubr.msk.bf16.mxu1 %vm2817_vm0, %v2816_v1 }
 0x24a   :  { %2474 = vmatprep.subr.bf16.mxu1 %v2816_v1 }
 0x250   :  { %2465 = vmatmul.mubr.msk.bf16.vlgmr.msra.gmra.mrb[12].mxu1 %vm198_vm3, %v453_v39 }
 0x251   :  { %2475 = vmatpush3.bf16.xpose.msra.mxu1 %v587_v40  ;;  %2476 = vmatprep.mubr.msk.bf16.mxu1 %vm2817_vm0, %v2816_v1 }
 0x252   :  { %2486 = vmatprep.subr.bf16.mxu1 %v2816_v1 }
 0x258   :  { %2477 = vmatmul.mubr.msk.bf16.vlgmr.msra.gmra.mrb[16].mxu1 %vm198_vm3, %v580_v41 }
 0x259   :  { %2490 = vmatprep.mubr.msk.bf16.mxu1 %vm2817_vm0, %v2816_v1 }
 0x313   :  { %v239_v42 = vpop.f32.mrb[4].mxu1 }
 0x314   :  { %v246_v44 = vmul.f32 0.35355338, %v239_v42  ;;  %v2442_v45 = vpop.f32.mrb[5].mxu1 }
 0x315   :  { %v242_v46 = vpop.f32.mrb[6].mxu1 }
 0x316   :  { %v247_v48 = vmul.f32 0.35355338, %v242_v46  ;;  %v2443_v49 = vpop.f32.mrb[7].mxu1  ;;  %v248_v50 = vadd.f32 %v246_v44, %v3006_v43 }
 0x318   :  { %v251_v51 = vsel %vm250_vm4, %v248_v50, -inf  ;;  %v249_v52 = vadd.f32 %v247_v48, %v3011_v47 }
 0x319   :  { %252 = vmax.xlane.f32.xlu1 %v251_v51 }
 0x31a   :  { %v255_v53 = vsel %vm254_vm5, %v249_v52, -inf }
 0x31b   :  { %v369_v54 = vpop.f32.mrb[8].mxu1  ;;  %256 = vmax.xlane.f32.xlu0 %v255_v53 }
 0x31c   :  { %v376_v55 = vmul.f32 0.35355338, %v369_v54  ;;  %v2454_v56 = vpop.f32.mrb[9].mxu1 }
 0x31d   :  { %v372_v57 = vpop.f32.mrb[10].mxu1 }
 0x31e   :  { %v377_v58 = vmul.f32 0.35355338, %v372_v57  ;;  %v2455_v59 = vpop.f32.mrb[11].mxu1  ;;  %v378_v60 = vadd.f32 %v376_v55, %v3006_v43 }
 0x320   :  { %v380_v61 = vsel %vm250_vm4, %v378_v60, -inf  ;;  %v379_v62 = vadd.f32 %v377_v58, %v3011_v47 }
 0x321   :  { %381 = vmax.xlane.f32.xlu0 %v380_v61 }
 0x322   :  { %v383_v63 = vsel %vm254_vm5, %v379_v62, -inf }
 0x323   :  { %v496_v0 = vpop.f32.mrb[12].mxu1  ;;  %384 = vmax.xlane.f32.xlu1 %v383_v63 }
 0x324   :  { %v503_v2 = vmul.f32 0.35355338, %v496_v0  ;;  %v2466_v3 = vpop.f32.mrb[13].mxu1 }
 0x325   :  { %v499_v4 = vpop.f32.mrb[14].mxu1 }
 0x326   :  { %v504_v5 = vmul.f32 0.35355338, %v499_v4  ;;  %v2467_v6 = vpop.f32.mrb[15].mxu1  ;;  %v505_v7 = vadd.f32 %v503_v2, %v3006_v43 }
 0x328   :  { %v507_v8 = vsel %vm250_vm4, %v505_v7, -inf  ;;  %v506_v9 = vadd.f32 %v504_v5, %v3011_v47 }
 0x329   :  { %508 = vmax.xlane.f32.xlu0 %v507_v8 }
 0x32a   :  { %v510_v10 = vsel %vm254_vm5, %v506_v9, -inf }
 0x32b   :  { %v623_v11 = vpop.f32.mrb[16].mxu1  ;;  %511 = vmax.xlane.f32.xlu1 %v510_v10 }
 0x32c   :  { %v630_v12 = vmul.f32 0.35355338, %v623_v11  ;;  %v2478_v13 = vpop.f32.mrb[17].mxu1 }
 0x32d   :  { %v626_v14 = vpop.f32.mrb[18].mxu1 }
 0x32e   :  { %v631_v17 = vmul.f32 0.35355338, %v626_v14  ;;  %v2479_v18 = vpop.f32.mrb[19].mxu1  ;;  %v632_v19 = vadd.f32 %v630_v12, %v3006_v43 }
 0x330   :  { %v634_v23 = vsel %vm250_vm4, %v632_v19, -inf  ;;  %v633_v24 = vadd.f32 %v631_v17, %v3011_v47 }
 0x331   :  { %635 = vmax.xlane.f32.xlu0 %v634_v23 }
 0x332   :  { %v637_v25 = vsel %vm254_vm5, %v633_v24, -inf }
 0x333   :  { %638 = vmax.xlane.f32.xlu1 %v637_v25 }
 0x3a6   :  { %v253_v26 = vpop.xlane.xlu1 %252 }
 0x3a7   :  { %v258_v27 = vsub.f32 %v248_v50, %v253_v26 }
 0x3a8   :  { %v257_v28 = vpop.xlane.xlu0 %256 }
 0x3a9   :  { %v260_v29 = vmul.f32 1.442695, %v258_v27  ;;  %v259_v31 = vsub.f32 %v249_v52, %v257_v28 }
 0x3ab   :  { %2692 = vpow2.f32 %v260_v29  ;;  %v262_v32 = vmul.f32 1.442695, %v259_v31 }
 0x3ad   :  { %2694 = vpow2.f32 %v262_v32 }
 0x3ae   :  { %v382_v33 = vpop.xlane.xlu0 %381 }
 0x3af   :  { %v386_v34 = vsub.f32 %v378_v60, %v382_v33 }
 0x3b0   :  { %v385_v42 = vpop.xlane.xlu1 %384 }
 0x3b1   :  { %v388_v35 = vmul.f32 1.442695, %v386_v34  ;;  %v387_v44 = vsub.f32 %v379_v62, %v385_v42 }
 0x3b3   :  { %2696 = vpow2.f32 %v388_v35  ;;  %v390_v48 = vmul.f32 1.442695, %v387_v44 }
 0x3b5   :  { %v2693_v36 = vpop.eup %2692  ;;  %2698 = vpow2.f32 %v390_v48 }
 0x3b6   :  { %v264_v37 = vsel %vm250_vm4, %v2693_v36, 0.0  ;;  %v509_v46 = vpop.xlane.xlu0 %508 }
 0x3b7   :  { %v2695_v38 = vpop.eup %2694  ;;  %265 = vadd.xlane.f32.xlu0 %v264_v37  ;;  %v513_v51 = vsub.f32 %v505_v7, %v509_v46 }
 0x3b8   :  { %v267_v39 = vsel %vm254_vm5, %v2695_v38, 0.0  ;;  %v512_v45 = vpop.xlane.xlu1 %511 }
 0x3b9   :  { %268 = vadd.xlane.f32.xlu1 %v267_v39  ;;  %v514_v49 = vsub.f32 %v506_v9, %v512_v45  ;;  %v515_v55 = vmul.f32 1.442695, %v513_v51 }
 0x3bb   :  { %v517_v53 = vmul.f32 1.442695, %v514_v49 }
 0x3bd   :  { %v3031_v40 = vpop.eup %2696  ;;  %2700 = vpow2.f32 %v517_v53 }
 0x3be   :  { %v392_v41 = vsel %vm250_vm4, %v3031_v40, 0.0  ;;  %v636_v52 = vpop.xlane.xlu0 %635  ;;  %2702 = vpow2.f32 %v515_v55 }
 0x3bf   :  { %393 = vadd.xlane.f32.xlu0 %v392_v41  ;;  %v640_v56 = vsub.f32 %v632_v19, %v636_v52  ;;  %v2699_v59 = vpop.eup %2698 }
 0x3c0   :  { %v639_v50 = vpop.xlane.xlu1 %638  ;;  %v395_v60 = vsel %vm254_vm5, %v2699_v59, 0.0 }
 0x3c1   :  { %v641_v54 = vsub.f32 %v633_v24, %v639_v50  ;;  %v642_v58 = vmul.f32 1.442695, %v640_v56  ;;  %v2672_v56 = vld [vmem:[%s3458_s6] sm:$0xff]  }
 0x3c2   :  { %2487 = vmatpush3.bf16.msra.mxu1 %v2672_v56 }
 0x3c3   :  { %v644_v57 = vmul.f32 1.442695, %v641_v54  ;;  %2488 = vmatprep.subr.bf16.mxu1 %v2816_v1 }
 0x3c5   :  { %2704 = vpow2.f32 %v644_v57 }
 0x3c6   :  { %2706 = vpow2.f32 %v642_v58 }
 0x3c7   :  { %v3040_v61 = vpop.eup %2700 }
 0x3c8   :  { %v2703_v62 = vpop.eup %2702  ;;  %v522_v63 = vsel %vm254_vm5, %v3040_v61, 0.0 }
 0x3c9   :  { %v519_v2 = vsel %vm250_vm4, %v2703_v62, 0.0 }
 0x3ca   :  { %403 = vrot.lane.b32.xlu1 %v2966_v30, %s2825_s4 }
 0x3cf   :  { %v3044_v0 = vpop.eup %2704 }
 0x3d0   :  { %v3047_v3 = vpop.eup %2706  ;;  %v649_v4 = vsel %vm254_vm5, %v3044_v0, 0.0 }
 0x3d1   :  { %v646_v5 = vsel %vm250_vm4, %v3047_v3, 0.0 }
 0x3d5   :  { %275 = vrot.lane.b32.xlu0 %v2966_v30, %s2826_s15 }
 0x3ee   :  { %396 = vadd.xlane.f32.xlu1 %v395_v60 }
 0x3f2   :  { %523 = vadd.xlane.f32.xlu1 %v522_v63 }
 0x3f4   :  { %520 = vadd.xlane.f32.xlu0 %v519_v2 }
 0x3f6   :  { %650 = vadd.xlane.f32.xlu1 %v649_v4 }
 0x3f8   :  { %647 = vadd.xlane.f32.xlu0 %v646_v5 }
 0x407   :  { %530 = vrot.lane.b32.xlu1 %v2966_v30, %s2827_s0 }
 0x40e   :  { %657 = vrot.lane.b32.xlu0 %v2966_v30, %s2828_s16 }
 0x444   :  { %v266_v6 = vpop.xlane.xlu0 %265 }
 0x445   :  { %2708 = vrcp.f32 %v266_v6 }
 0x446   :  { %v269_v7 = vpop.xlane.xlu1 %268 }
 0x447   :  { %2710 = vrcp.f32 %v269_v7 }
 0x44a   :  { %v404_v17 = vpop.permute.xlu1 %403 }
 0x44b   :  { %v409_v30 = vsel %vm280_vm6, %v404_v17, 0 }
 0x44c   :  { %v394_v8 = vpop.xlane.xlu0 %393 }
 0x44d   :  { %2712 = vrcp.f32 %v394_v8 }
 0x44f   :  { %v2709_v9 = vpop.eup %2708 }
 0x450   :  { %v276_v10 = vpop.permute.xlu0 %275  ;;  %v272_v13 = vmul.f32 %v2709_v9, %v2693_v36 }
 0x451   :  { %v2711_v11 = vpop.eup %2710  ;;  %v282_v12 = vsel %vm280_vm6, %v276_v10, 0 }
 0x452   :  { %v273_v14 = vmul.f32 %v2711_v11, %v2695_v38  ;;  %2445 = vmatpush3.bf16.msra.mxu0 %v282_v12 }
 0x453   :  { %2456 = vmatprep.subr.bf16.mxu0 %v2816_v1 }
 0x454   :  { %v274_v18 = vpack.c.bf16 %v273_v14, %v272_v13 }
 0x456   :  { %2447 = vmatmul.mubr.msk.bf16.vlgmr.msra.gmra.mrb[4].mxu0 %vm250_vm4, %v274_v18 }
 0x457   :  { %2457 = vmatpush3.bf16.msra.mxu0 %v409_v30  ;;  %2458 = vmatprep.mubr.msk.bf16.mxu0 %vm2817_vm0, %v2816_v1  ;;  %v2713_v26 = vpop.eup %2712 }
 0x458   :  { %2468 = vmatprep.subr.bf16.mxu0 %v2816_v1  ;;  %v400_v29 = vmul.f32 %v2713_v26, %v3031_v40 }
 0x47b   :  { %v397_v19 = vpop.xlane.xlu1 %396 }
 0x47c   :  { %2714 = vrcp.f32 %v397_v19 }
 0x47f   :  { %v524_v23 = vpop.xlane.xlu1 %523 }
 0x480   :  { %2716 = vrcp.f32 %v524_v23 }
 0x481   :  { %v521_v24 = vpop.xlane.xlu0 %520 }
 0x482   :  { %2718 = vrcp.f32 %v521_v24 }
 0x483   :  { %v651_v25 = vpop.xlane.xlu1 %650 }
 0x485   :  { %v648_v27 = vpop.xlane.xlu0 %647 }
 0x486   :  { %v2715_v28 = vpop.eup %2714  ;;  %2720 = vrcp.f32 %v648_v27  ;;  %v3102_v27 = vsub.s32 1, %v2954_v20 }
 0x487   :  { %v401_v31 = vmul.f32 %v2715_v28, %v2699_v59  ;;  %v531_v32 = vpop.permute.xlu1 %530  ;;  %2722 = vrcp.f32 %v651_v25 }
 0x488   :  { %v536_v35 = vsel %vm280_vm6, %v531_v32, 0  ;;  %v746_v28 = vrot.slane %v2962_v22, %v3102_v27 }
 0x489   :  { %v402_v33 = vpack.c.bf16 %v401_v31, %v400_v29  ;;  %v658_v39 = vpop.permute.xlu0 %657 }
 0x48a   :  { %v2717_v34 = vpop.eup %2716  ;;  %v663_v42 = vsel %vm280_vm6, %v658_v39, 0 }
 0x48b   :  { %2459 = vmatmul.mubr.msk.bf16.vlgmr.msra.gmra.mrb[8].mxu0 %vm250_vm4, %v402_v33  ;;  %v528_v38 = vmul.f32 %v2717_v34, %v3040_v61  ;;  %v2673_v61 = vld [vmem:[%s3458_s6 + $0x8] sm:$0xff]  }
 0x48c   :  { %v2719_v36 = vpop.eup %2718  ;;  %2469 = vmatpush3.bf16.msra.mxu0 %v536_v35  ;;  %2470 = vmatprep.mubr.msk.bf16.mxu0 %vm2817_vm0, %v2816_v1 }
 0x48d   :  { %v527_v37 = vmul.f32 %v2719_v36, %v2703_v62  ;;  %2480 = vmatprep.subr.bf16.mxu0 %v2816_v1  ;;  %2489 = vmatpush3.bf16.msra.mxu1 %v2673_v61 }
 0x48e   :  { %2502 = vmatprep.subr.bf16.mxu1 %v2816_v1 }
 0x48f   :  { %v529_v40 = vpack.c.bf16 %v528_v38, %v527_v37 }
 0x490   :  { %v2721_v41 = vpop.eup %2720 }
 0x491   :  { %v2723_v44 = vpop.eup %2722  ;;  %v654_v45 = vmul.f32 %v2721_v41, %v3047_v3 }
 0x492   :  { %v655_v46 = vmul.f32 %v2723_v44, %v3044_v0 }
 0x493   :  { %2471 = vmatmul.mubr.msk.bf16.vlgmr.msra.gmra.mrb[12].mxu0 %vm250_vm4, %v529_v40 }
 0x494   :  { %2481 = vmatpush3.bf16.msra.mxu0 %v663_v42  ;;  %2482 = vmatprep.mubr.msk.bf16.mxu0 %vm2817_vm0, %v2816_v1  ;;  %v656_v48 = vpack.c.bf16 %v655_v46, %v654_v45 }
 0x495   :  { %2494 = vmatprep.subr.bf16.mxu0 %v2816_v1 }
 0x49b   :  { %2483 = vmatmul.mubr.msk.bf16.vlgmr.msra.gmra.mrb[16].mxu0 %vm250_vm4, %v656_v48 }
 0x49c   :  { %2498 = vmatprep.mubr.msk.bf16.mxu0 %vm2817_vm0, %v2816_v1 }
 0x529   :  { %v318_v49 = vpop.f32.mrb[4].mxu0 }
 0x52a   :  { %v2448_v50 = vpop.f32.mrb[5].mxu0 }
 0x52b   :  { %v321_v51 = vpop.f32.mrb[6].mxu0 }
 0x52c   :  { %v2449_v52 = vpop.f32.mrb[7].mxu0 }
 0x55e   :  { %v445_v53 = vpop.f32.mrb[8].mxu0 }
 0x55f   :  { %v2460_v54 = vpop.f32.mrb[9].mxu0 }
 0x560   :  { %v448_v55 = vpop.f32.mrb[10].mxu0 }
 0x561   :  { %v2636_v57 = vpack.i.bf16 %v448_v55, %v445_v53  ;;  %v2461_v58 = vpop.f32.mrb[11].mxu0 }
 0x562   :  { %v835_v58 = vsub.s32 4, %v2954_v20 }
 0x563   :  { %2637 = vrot.lane.b32.xlu1 %v2636_v57, %s2829_s19 }
 0x566   :  { %v572_v59 = vpop.f32.mrb[12].mxu0 }
 0x567   :  { %v2472_v60 = vpop.f32.mrb[13].mxu0 }
 0x568   :  { %v575_v62 = vpop.f32.mrb[14].mxu0  ;;  %v836_v60 = vrot.slane %v2962_v22, %v835_v58 }
 0x569   :  { %v2641_v63 = vpack.i.bf16 %v575_v62, %v572_v59  ;;  %v2473_v0 = vpop.f32.mrb[15].mxu0  ;;  %v841_v62 = vsub.s32 5, %v2954_v20 }
 0x56b   :  { %2642 = vrot.lane.b32.xlu0 %v2641_v63, %s2830_s21 }
 0x56e   :  { %v699_v2 = vpop.f32.mrb[16].mxu0 }
 0x56f   :  { %v2484_v3 = vpop.f32.mrb[17].mxu0 }
 0x570   :  { %v702_v4 = vpop.f32.mrb[18].mxu0  ;;  %v842_v3 = vrot.slane %v2962_v22, %v841_v62 }
 0x571   :  { %v2646_v5 = vpack.i.bf16 %v702_v4, %v699_v2  ;;  %v2485_v6 = vpop.f32.mrb[19].mxu0 }
 0x573   :  { %2647 = vrot.lane.b32.xlu1 %v2646_v5, %s2831_s29 }
 0x5d5   :  { %v2638_v7 = vpop.permute.xlu1 %2637 }
 0x5d6   :  { %v2640_v9 = vunpack.i.h.bf16 %v2638_v7  ;;  %v2639_v10 = vunpack.i.l.bf16 %v2638_v7 }
 0x5d8   :  { %v731_v14 = vsel %vm198_vm3, %v321_v51, %v2640_v9  ;;  %v730_v17 = vsel %vm198_vm3, %v318_v49, %v2639_v10  ;;  %v2675_v51 = vld [vmem:[%s3459_s7 + $0x8] sm:$0xff]   ;;  %v2678_v10 = vld [vmem:[%s3460_s8 + $0x10] sm:$0xff]  }
 0x5d9   :  { %v2677_v9 = vld [vmem:[%s3460_s8 + $0x8] sm:$0xff]  }
 0x5dd   :  { %v2643_v8 = vpop.permute.xlu0 %2642 }
 0x5de   :  { %v2645_v11 = vunpack.i.h.bf16 %v2643_v8  ;;  %v2644_v12 = vunpack.i.l.bf16 %v2643_v8  ;;  %v2676_v8 = vld [vmem:[%s3460_s8] sm:$0xff]  }
 0x5e0   :  { %v733_v19 = vsel %vm732_vm7, %v730_v17, %v2644_v12  ;;  %v734_v23 = vsel %vm732_vm7, %v731_v14, %v2645_v11  ;;  %v2679_v11 = vld [vmem:[%s3460_s8 + $0x18] sm:$0xff]   ;;  %v3154_v12 = vsub.s32 2, %v2954_v20 }
 0x5e5   :  { %v2648_v13 = vpop.permute.xlu1 %2647 }
 0x5e6   :  { %v2650_v18 = vunpack.i.h.bf16 %v2648_v13  ;;  %v2649_v30 = vunpack.i.l.bf16 %v2648_v13  ;;  %v853_v13 = vrot.slane %v2962_v22, %v3154_v12 }
 0x5e8   :  { %v736_v24 = vsel %vm735_vm8, %v733_v19, %v2649_v30  ;;  %v737_v25 = vsel %vm735_vm8, %v734_v23, %v2650_v18 }
 0x5e9   :  { %v738_v26 = vpack.c.bf16 %v737_v25, %v736_v24 }
 0x5eb   :  { %2491 = vmatmul.mubr.msk.bf16.vlgmr.msra.gmra.mrb[20].mxu1 %vm149_vm2, %v738_v26 }
 0x5ec   :  { %2510 = vmatprep.mubr.msk.bf16.mxu1 %vm2817_vm0, %v2816_v1  ;;  %2503 = vmatpush3.bf16.msra.mxu1 %v2676_v8 }
 0x5ed   :  { %2504 = vmatprep.subr.bf16.mxu1 %v2816_v1 }
 0x5f0   :  { %2505 = vmatpush3.bf16.msra.mxu1 %v2677_v9 }
 0x5f1   :  { %2506 = vmatprep.subr.bf16.mxu1 %v2816_v1 }
 0x5f4   :  { %2507 = vmatpush3.bf16.msra.mxu1 %v2678_v10 }
 0x5f5   :  { %2508 = vmatprep.subr.bf16.mxu1 %v2816_v1 }
 0x5f8   :  { %2509 = vmatpush3.bf16.msra.mxu1 %v2679_v11 }
 0x5f9   :  { %2528 = vmatprep.subr.bf16.mxu1 %v2816_v1 }
 0x6be   :  { %v796_v29 = vpop.f32.mrb[20].mxu1 }
 0x6bf   :  { %v797_v31 = vadd.f32 %v796_v29, %v746_v28  ;;  %v2492_v32 = vpop.f32.mrb[21].mxu1 }
 0x6c0   :  { %v799_v33 = vpop.f32.mrb[22].mxu1 }
 0x6c1   :  { %v800_v34 = vadd.f32 %v799_v33, %v746_v28  ;;  %v2493_v35 = vpop.f32.mrb[23].mxu1  ;;  %v803_v36 = vadd.f32 %v797_v31, %v2945_v15 }
 0x6c3   :  { %v805_v37 = vsel %vm149_vm2, %v803_v36, 0.0  ;;  %v804_v38 = vadd.f32 %v800_v34, %v2947_v16  ;;  %v2674_v16 = vld [vmem:[%s3459_s7] sm:$0xff]  }
 0x6c4   :  { %806 = vadd.xlane.f32.xlu0 %v805_v37  ;;  %2495 = vmatpush3.bf16.msra.mxu0 %v2674_v16 }
 0x6c5   :  { %v809_v39 = vsel %vm808_vm9, %v804_v38, 0.0  ;;  %2496 = vmatprep.subr.bf16.mxu0 %v2816_v1 }
 0x6c6   :  { %810 = vadd.xlane.f32.xlu1 %v809_v39 }
 0x6c8   :  { %2497 = vmatpush3.bf16.msra.mxu0 %v2675_v51 }
 0x6c9   :  { %2514 = vmatprep.subr.bf16.mxu0 %v2816_v1 }
 0x751   :  { %v807_v40 = vpop.xlane.xlu0 %806 }
 0x752   :  { %v813_v41 = vmul.f32 0.03125, %v807_v40 }
 0x753   :  { %v811_v42 = vpop.xlane.xlu1 %810 }
 0x754   :  { %v815_v44 = vsub.f32 %v803_v36, %v813_v41  ;;  %v814_v45 = vmul.f32 0.03125, %v811_v42 }
 0x756   :  { %v816_v46 = vsub.f32 %v804_v38, %v814_v45  ;;  %v817_v48 = vmul.f32 %v815_v44, %v815_v44 }
 0x758   :  { %v819_v49 = vsel %vm149_vm2, %v817_v48, 0.0  ;;  %v818_v50 = vmul.f32 %v816_v46, %v816_v46 }
 0x759   :  { %820 = vadd.xlane.f32.xlu0 %v819_v49 }
 0x75a   :  { %v822_v15 = vsel %vm808_vm9, %v818_v50, 0.0 }
 0x75d   :  { %823 = vadd.xlane.f32.xlu0 %v822_v15 }
 0x7e6   :  { %v821_v52 = vpop.xlane.xlu0 %820 }
 0x7e7   :  { %v825_v53 = vmul.f32 0.03125, %v821_v52 }
 0x7e9   :  { %v827_v54 = vadd.f32 1e-05, %v825_v53 }
 0x7ea   :  { %v824_v55 = vpop.xlane.xlu0 %823 }
 0x7eb   :  { %2724 = vrsqrt.f32 %v827_v54  ;;  %v826_v56 = vmul.f32 0.03125, %v824_v55 }
 0x7ed   :  { %v828_v57 = vadd.f32 1e-05, %v826_v56 }
 0x7ef   :  { %2726 = vrsqrt.f32 %v828_v57 }
 0x7f5   :  { %v2725_v59 = vpop.eup %2724 }
 0x7f6   :  { %v831_v61 = vmul.f32 %v2725_v59, %v815_v44 }
 0x7f8   :  { %v837_v0 = vmul.f32 %v836_v60, %v831_v61 }
 0x7f9   :  { %v2727_v63 = vpop.eup %2726 }
 0x7fa   :  { %v832_v2 = vmul.f32 %v2727_v63, %v816_v46  ;;  %v3128_v5 = vadd.f32 %v842_v3, %v837_v0 }
 0x7fc   :  { %v838_v4 = vmul.f32 %v836_v60, %v832_v2 }
 0x7fe   :  { %v3130_v6 = vadd.f32 %v842_v3, %v838_v4 }
 0x800   :  { %v845_v7 = vpack.c.bf16 %v3130_v6, %v3128_v5 }
 0x802   :  { %2499 = vmatmul.mubr.msk.bf16.vlgmr.msra.gmra.mrb[20].mxu0 %vm149_vm2, %v845_v7 }
 0x803   :  { %2518 = vmatprep.mubr.msk.bf16.mxu0 %vm2817_vm0, %v2816_v1 }
 0x8d5   :  { %v903_v14 = vpop.f32.mrb[20].mxu0 }
 0x8d6   :  { %v3158_v17 = vadd.f32 %v903_v14, %v853_v13  ;;  %v2500_v18 = vpop.f32.mrb[21].mxu0 }
 0x8d7   :  { %v906_v30 = vpop.f32.mrb[22].mxu0 }
 0x8d8   :  { %v3161_v19 = vmul.f32 0.70710677, %v3158_v17  ;;  %v3163_v23 = vadd.f32 %v906_v30, %v853_v13  ;;  %v2501_v24 = vpop.f32.mrb[23].mxu0 }
 0x8da   :  { %v914_v25 = vand.u32 2147483647, %v3161_v19  ;;  %v3167_v26 = vmul.f32 0.70710677, %v3163_v23  ;;  %vm976_vm10 = vcmp.ge.f32.partialorder %v3161_v19, 0.0  ;;  %v999_v19 = vsub.s32 3, %v2954_v20 }
 0x8dc   :  { %v916_v28 = vmul.f32 0.5, %v914_v25  ;;  %v915_v29 = vand.u32 2147483647, %v3167_v26  ;;  %v964_v63 = vsub.f32 0.0, %v914_v25  ;;  %vm977_vm11 = vcmp.ge.f32.partialorder %v3167_v26, 0.0 }
 0x8dd   :  { %v1000_v26 = vrot.slane %v2962_v22, %v999_v19 }
 0x8de   :  { %v918_v31 = vadd.f32 1.0, %v916_v28  ;;  %v917_v32 = vmul.f32 0.5, %v915_v29  ;;  %v966_v14 = vmul.f32 %v964_v63, %v914_v25  ;;  %v965_v18 = vsub.f32 0.0, %v915_v29 }
 0x8e0   :  { %2728 = vrcp.f32 %v918_v31  ;;  %v919_v33 = vadd.f32 1.0, %v917_v32 }
 0x8e2   :  { %2730 = vrcp.f32 %v919_v33 }
 0x8ea   :  { %v2729_v34 = vpop.eup %2728 }
 0x8eb   :  { %v922_v35 = vmul.f32 %v2729_v34, %v2729_v34  ;;  %v932_v36 = vmul.f32 0.09678418, %v2729_v34  ;;  %v936_v38 = vmul.f32 0.27886808, %v2729_v34  ;;  %v940_v39 = vmul.f32 1.4885159, %v2729_v34 }
 0x8ec   :  { %v2731_v37 = vpop.eup %2730  ;;  %v928_v40 = vmul.f32 1.0000237, %v2729_v34  ;;  %v944_v46 = vmul.f32 0.17087276, %v2729_v34 }
 0x8ed   :  { %v934_v41 = vadd.f32 0.37409195, %v932_v36  ;;  %v924_v42 = vmul.f32 %v922_v35, %v922_v35  ;;  %v942_v44 = vadd.f32 -1.135204, %v940_v39  ;;  %v923_v45 = vmul.f32 %v2731_v37, %v2731_v37 }
 0x8ee   :  { %v933_v49 = vmul.f32 0.09678418, %v2731_v37  ;;  %v937_v50 = vmul.f32 0.27886808, %v2731_v37  ;;  %v938_v15 = vadd.f32 -0.18628806, %v936_v38  ;;  %v967_v39 = vmul.f32 %v965_v18, %v915_v29 }
 0x8ef   :  { %v948_v48 = vmul.f32 %v934_v41, %v922_v35  ;;  %v952_v16 = vmul.f32 %v942_v44, %v922_v35  ;;  %v941_v51 = vmul.f32 1.4885159, %v2731_v37  ;;  %v930_v52 = vadd.f32 -1.2655122, %v928_v40 }
 0x8f0   :  { %v929_v53 = vmul.f32 1.0000237, %v2731_v37  ;;  %v935_v54 = vadd.f32 0.37409195, %v933_v49  ;;  %v926_v55 = vmul.f32 %v924_v42, %v924_v42  ;;  %v925_v57 = vmul.f32 %v923_v45, %v923_v45 }
 0x8f1   :  { %v954_v56 = vadd.f32 %v952_v16, %v938_v15  ;;  %v943_v59 = vadd.f32 -1.135204, %v941_v51  ;;  %v946_v60 = vadd.f32 -0.82215226, %v944_v46  ;;  %v950_v61 = vadd.f32 %v948_v48, %v930_v52 }
 0x8f2   :  { %v939_v0 = vadd.f32 -0.18628806, %v937_v50  ;;  %v945_v3 = vmul.f32 0.17087276, %v2731_v37  ;;  %v949_v4 = vmul.f32 %v935_v54, %v923_v45  ;;  %v931_v8 = vadd.f32 -1.2655122, %v929_v53 }
 0x8f3   :  { %v956_v2 = vmul.f32 %v954_v56, %v924_v42  ;;  %v953_v7 = vmul.f32 %v943_v59, %v923_v45  ;;  %v960_v10 = vmul.f32 %v946_v60, %v926_v55  ;;  %v927_v11 = vmul.f32 %v925_v57, %v925_v57 }
 0x8f4   :  { %v947_v24 = vadd.f32 -0.82215226, %v945_v3  ;;  %v951_v28 = vadd.f32 %v949_v4, %v931_v8  ;;  %v910_v29 = vmul.f32 0.5, %v3158_v17  ;;  %v911_v52 = vmul.f32 0.5, %v3163_v23 }
 0x8f5   :  { %v958_v9 = vadd.f32 %v956_v2, %v950_v61  ;;  %v955_v13 = vadd.f32 %v953_v7, %v939_v0 }
 0x8f6   :  { %v961_v35 = vmul.f32 %v947_v24, %v927_v11 }
 0x8f7   :  { %v962_v30 = vadd.f32 %v960_v10, %v958_v9  ;;  %v957_v31 = vmul.f32 %v955_v13, %v925_v57 }
 0x8f9   :  { %v968_v32 = vadd.f32 %v966_v14, %v962_v30  ;;  %v959_v33 = vadd.f32 %v957_v31, %v951_v28  ;;  %v2681_v14 = vld [vmem:[%s3457_s5 + $0x18] sm:$0xff]  }
 0x8fb   :  { %v970_v36 = vmul.f32 1.442695, %v968_v32  ;;  %v963_v38 = vadd.f32 %v961_v35, %v959_v33  ;;  %v1099_v33 = vsub.s32 6, %v2954_v20 }
 0x8fd   :  { %2732 = vpow2.f32 %v970_v36  ;;  %v969_v40 = vadd.f32 %v967_v39, %v963_v38  ;;  %v1100_v35 = vrot.slane %v2962_v22, %v1099_v33  ;;  %v1105_v36 = vsub.s32 7, %v2954_v20 }
 0x8ff   :  { %v972_v41 = vmul.f32 1.442695, %v969_v40 }
 0x901   :  { %2734 = vpow2.f32 %v972_v41 }
 0x907   :  { %v2733_v42 = vpop.eup %2732 }
 0x908   :  { %v974_v44 = vmul.f32 %v2733_v42, %v2729_v34 }
 0x90a   :  { %v978_v45 = vsub.f32 1.0, %v974_v44  ;;  %v2290_v46 = vadd.f32 -1.0, %v974_v44  ;;  %v1106_v44 = vrot.slane %v2962_v22, %v1105_v36 }
 0x90b   :  { %v2735_v25 = vpop.eup %2734 }
 0x90c   :  { %v982_v48 = vsel %vm976_vm10, %v978_v45, %v2290_v46  ;;  %v975_v49 = vmul.f32 %v2735_v25, %v2731_v37 }
 0x90d   :  { %v984_v16 = vadd.f32 1.0, %v982_v48 }
 0x90e   :  { %v979_v50 = vsub.f32 1.0, %v975_v49  ;;  %v2291_v15 = vadd.f32 -1.0, %v975_v49  ;;  %v3215_v49 = vld [vmem:[%s3461_s9 + $0x8] sm:$0xff] }
 0x90f   :  { %v986_v54 = vmul.f32 %v984_v16, %v910_v29  ;;  %v1120_v22 = vrot.slane %v3215_v49, %v2957_v21 }
 0x910   :  { %v983_v51 = vsel %vm977_vm11, %v979_v50, %v2291_v15 }
 0x911   :  { %v985_v53 = vadd.f32 1.0, %v983_v51 }
 0x913   :  { %v987_v34 = vmul.f32 %v985_v53, %v911_v52 }
 0x915   :  { %v988_v55 = vpack.c.bf16 %v987_v34, %v986_v54 }
 0x917   :  { %2511 = vmatmul.mubr.msk.bf16.vlgmr.msra.gmra.mrb[24].mxu1 %vm82_vm1, %v988_v55 }
 0x918   :  { %2530 = vmatprep.mubr.msk.bf16.mxu1 %vm2817_vm0, %v2816_v1 }
 0x9ea   :  { %v1062_v37 = vpop.f32.mrb[24].mxu1 }
 0x9eb   :  { %v1063_v56 = vadd.f32 %v1062_v37, %v1000_v26  ;;  %v2512_v17 = vpop.f32.mrb[25].mxu1 }
 0x9ec   :  { %v1065_v57 = vpop.f32.mrb[26].mxu1 }
 0x9ed   :  { %v1066_v23 = vadd.f32 %v1065_v57, %v1000_v26  ;;  %v2513_v59 = vpop.f32.mrb[27].mxu1  ;;  %v1069_v60 = vadd.f32 %v1063_v56, %v3128_v5 }
 0x9ef   :  { %v1071_v61 = vsel %vm149_vm2, %v1069_v60, 0.0  ;;  %v1070_v63 = vadd.f32 %v1066_v23, %v3130_v6  ;;  %v2680_v6 = vld [vmem:[%s3457_s5 + $0x10] sm:$0xff]  }
 0x9f0   :  { %1072 = vadd.xlane.f32.xlu1 %v1071_v61  ;;  %2515 = vmatpush3.bf16.msra.mxu0 %v2680_v6 }
 0x9f1   :  { %v1074_v0 = vsel %vm808_vm9, %v1070_v63, 0.0  ;;  %2516 = vmatprep.subr.bf16.mxu0 %v2816_v1 }
 0x9f2   :  { %1075 = vadd.xlane.f32.xlu0 %v1074_v0 }
 0x9f4   :  { %2517 = vmatpush3.bf16.msra.mxu0 %v2681_v14 }
 0x9f5   :  { %2522 = vmatprep.subr.bf16.mxu0 %v2816_v1 }
 0xa7d   :  { %v1073_v2 = vpop.xlane.xlu1 %1072 }
 0xa7e   :  { %v1077_v3 = vmul.f32 0.03125, %v1073_v2 }
 0xa7f   :  { %v1076_v4 = vpop.xlane.xlu0 %1075 }
 0xa80   :  { %v1079_v7 = vsub.f32 %v1069_v60, %v1077_v3  ;;  %v1078_v8 = vmul.f32 0.03125, %v1076_v4 }
 0xa82   :  { %v1080_v9 = vsub.f32 %v1070_v63, %v1078_v8  ;;  %v1081_v10 = vmul.f32 %v1079_v7, %v1079_v7 }
 0xa84   :  { %v1083_v11 = vsel %vm149_vm2, %v1081_v10, 0.0  ;;  %v1082_v13 = vmul.f32 %v1080_v9, %v1080_v9 }
 0xa85   :  { %1084 = vadd.xlane.f32.xlu1 %v1083_v11 }
 0xa86   :  { %v1086_v5 = vsel %vm808_vm9, %v1082_v13, 0.0 }
 0xa87   :  { %1087 = vadd.xlane.f32.xlu0 %v1086_v5 }
 0xb12   :  { %v1085_v18 = vpop.xlane.xlu1 %1084 }
 0xb13   :  { %v1089_v30 = vmul.f32 0.03125, %v1085_v18 }
 0xb14   :  { %v1088_v24 = vpop.xlane.xlu0 %1087 }
 0xb15   :  { %v1091_v28 = vadd.f32 1e-05, %v1089_v30  ;;  %v1090_v31 = vmul.f32 0.03125, %v1088_v24 }
 0xb17   :  { %2736 = vrsqrt.f32 %v1091_v28  ;;  %v1092_v32 = vadd.f32 1e-05, %v1090_v31 }
 0xb19   :  { %2738 = vrsqrt.f32 %v1092_v32 }
 0xb21   :  { %v2737_v38 = vpop.eup %2736 }
 0xb22   :  { %v1095_v39 = vmul.f32 %v2737_v38, %v1079_v7 }
 0xb23   :  { %v2739_v40 = vpop.eup %2738 }
 0xb24   :  { %v1101_v41 = vmul.f32 %v1100_v35, %v1095_v39  ;;  %v1096_v42 = vmul.f32 %v2739_v40, %v1080_v9 }
 0xb26   :  { %v1102_v45 = vmul.f32 %v1100_v35, %v1096_v42  ;;  %v3203_v46 = vadd.f32 %v1106_v44, %v1101_v41  ;;  %v2790_v42 = vld [vmem:[%s3454_s2] sm:$0xff] }
 0xb28   :  { %v3205_v25 = vadd.f32 %v1106_v44, %v1102_v45 }
 0xb2a   :  { %v1111_v48 = vpack.c.bf16 %v3205_v25, %v3203_v46 }
 0xb2c   :  { %2519 = vmatmul.mubr.msk.bf16.vlgmr.msra.gmra.mrb[24].mxu0 %vm149_vm2, %v1111_v48 }
 0xb2d   :  { %2524 = vmatprep.mubr.msk.bf16.mxu0 %vm2817_vm0, %v2816_v1 }
 0xbff   :  { %v1170_v50 = vpop.f32.mrb[24].mxu0 }
 0xc00   :  { %v2520_v15 = vpop.f32.mrb[25].mxu0  ;;  %v1171_v51 = vadd.f32 %v1170_v50, %v1120_v22 }
 0xc01   :  { %v1173_v16 = vpop.f32.mrb[26].mxu0 }
 0xc02   :  { %v1174_v29 = vadd.f32 %v1173_v16, %v1120_v22  ;;  %v2521_v52 = vpop.f32.mrb[27].mxu0 }
 0xc04   :  { %v3219_v53 = vpack.c.bf16 %v1174_v29, %v1171_v51 }
 0xc06   :  { %1306 = vrot.lane.b32.xlu0 %v3219_v53, %s2821_s25  ;;  %1179 = vrot.lane.b32.xlu1 %v3219_v53, %s2819_s23 }
 0xc0a   :  { %1431 = vrot.lane.b32.xlu0 %v3219_v53, %s2823_s27  ;;  %1304 = vrot.lane.b32.xlu1 %v3219_v53, %s2818_s22 }
 0xc0e   :  { %1558 = vrot.lane.b32.xlu0 %v3219_v53, %s2824_s28  ;;  %1433 = vrot.lane.b32.xlu1 %v3219_v53, %s2820_s24 }
 0xc12   :  { %1560 = vrot.lane.b32.xlu1 %v3219_v53, %s2822_s26 }
 0xc78   :  { %v1180_v54 = vpop.permute.xlu1 %1179  ;;  %v1307_v55 = vpop.permute.xlu0 %1306 }
 0xc79   :  { %v1185_v34 = vsel %vm198_vm3, %v1180_v54, 0  ;;  %v1312_v37 = vsel %vm198_vm3, %v1307_v55, 0 }
 0xc7a   :  { %2523 = vmatpush3.bf16.xpose.msra.mxu0 %v1185_v34 }
 0xc7b   :  { %2534 = vmatprep.subr.bf16.mxu0 %v2816_v1 }
 0xc7c   :  { %v1305_v26 = vpop.permute.xlu1 %1304  ;;  %v1432_v23 = vpop.permute.xlu0 %1431 }
 0xc80   :  { %v1434_v56 = vpop.permute.xlu1 %1433  ;;  %v1559_v60 = vpop.permute.xlu0 %1558 }
 0xc81   :  { %2525 = vmatmul.mubr.msk.bf16.vlgmr.msra.gmra.mrb[28].mxu0 %vm198_vm3, %v3219_v53  ;;  %v1439_v17 = vsel %vm198_vm3, %v1434_v56, 0 }
 0xc82   :  { %2535 = vmatpush3.bf16.xpose.msra.mxu0 %v1312_v37  ;;  %2536 = vmatprep.mubr.msk.bf16.mxu0 %vm2817_vm0, %v2816_v1 }
 0xc83   :  { %2546 = vmatprep.subr.bf16.mxu0 %v2816_v1 }
 0xc84   :  { %v1561_v57 = vpop.permute.xlu1 %1560 }
 0xc85   :  { %v1566_v59 = vsel %vm198_vm3, %v1561_v57, 0 }
 0xc89   :  { %2537 = vmatmul.mubr.msk.bf16.vlgmr.msra.gmra.mrb[32].mxu0 %vm198_vm3, %v1305_v26 }
 0xc8a   :  { %2547 = vmatpush3.bf16.xpose.msra.mxu0 %v1439_v17  ;;  %2548 = vmatprep.mubr.msk.bf16.mxu0 %vm2817_vm0, %v2816_v1 }
 0xc8b   :  { %2558 = vmatprep.subr.bf16.mxu0 %v2816_v1 }
 0xc91   :  { %2549 = vmatmul.mubr.msk.bf16.vlgmr.msra.gmra.mrb[36].mxu0 %vm198_vm3, %v1432_v23 }
 0xc92   :  { %2559 = vmatpush3.bf16.xpose.msra.mxu0 %v1566_v59  ;;  %2560 = vmatprep.mubr.msk.bf16.mxu0 %vm2817_vm0, %v2816_v1 }
 0xc93   :  { %2570 = vmatprep.subr.bf16.mxu0 %v2816_v1 }
 0xc99   :  { %2561 = vmatmul.mubr.msk.bf16.vlgmr.msra.gmra.mrb[40].mxu0 %vm198_vm3, %v1559_v60 }
 0xc9a   :  { %2574 = vmatprep.mubr.msk.bf16.mxu0 %vm2817_vm0, %v2816_v1 }
 0xd54   :  { %v1221_v61 = vpop.f32.mrb[28].mxu0 }
 0xd55   :  { %v1228_v63 = vmul.f32 0.35355338, %v1221_v61  ;;  %v2526_v0 = vpop.f32.mrb[29].mxu0 }
 0xd56   :  { %v1224_v2 = vpop.f32.mrb[30].mxu0 }
 0xd57   :  { %v1229_v3 = vmul.f32 0.35355338, %v1224_v2  ;;  %v2527_v4 = vpop.f32.mrb[31].mxu0  ;;  %v1230_v7 = vadd.f32 %v1228_v63, %v3006_v43 }
 0xd59   :  { %v1232_v8 = vsel %vm250_vm4, %v1230_v7, -inf  ;;  %v1231_v9 = vadd.f32 %v1229_v3, %v3011_v47 }
 0xd5a   :  { %1233 = vmax.xlane.f32.xlu1 %v1232_v8 }
 0xd5b   :  { %v1235_v10 = vsel %vm254_vm5, %v1231_v9, -inf }
 0xd5c   :  { %1236 = vmax.xlane.f32.xlu0 %v1235_v10  ;;  %v1348_v11 = vpop.f32.mrb[32].mxu0 }
 0xd5d   :  { %v1355_v13 = vmul.f32 0.35355338, %v1348_v11  ;;  %v2538_v5 = vpop.f32.mrb[33].mxu0 }
 0xd5e   :  { %v1351_v6 = vpop.f32.mrb[34].mxu0 }
 0xd5f   :  { %v1356_v14 = vmul.f32 0.35355338, %v1351_v6  ;;  %v2539_v18 = vpop.f32.mrb[35].mxu0  ;;  %v1357_v30 = vadd.f32 %v1355_v13, %v3006_v43 }
 0xd61   :  { %v1359_v24 = vsel %vm250_vm4, %v1357_v30, -inf  ;;  %v1358_v28 = vadd.f32 %v1356_v14, %v3011_v47  ;;  %v2791_v47 = vld [vmem:[%s3454_s2 + $0x8] sm:$0x3] }
 0xd62   :  { %1360 = vmax.xlane.f32.xlu0 %v1359_v24 }
 0xd63   :  { %v1362_v31 = vsel %vm254_vm5, %v1358_v28, -inf }
 0xd64   :  { %1363 = vmax.xlane.f32.xlu1 %v1362_v31  ;;  %v1475_v32 = vpop.f32.mrb[36].mxu0 }
 0xd65   :  { %v1482_v35 = vmul.f32 0.35355338, %v1475_v32  ;;  %v2550_v38 = vpop.f32.mrb[37].mxu0 }
 0xd66   :  { %v1478_v39 = vpop.f32.mrb[38].mxu0 }
 0xd67   :  { %v1483_v40 = vmul.f32 0.35355338, %v1478_v39  ;;  %v2551_v41 = vpop.f32.mrb[39].mxu0  ;;  %v1484_v44 = vadd.f32 %v2790_v42, %v1482_v35 }
 0xd69   :  { %v1486_v43 = vsel %vm250_vm4, %v1484_v44, -inf  ;;  %v1485_v45 = vadd.f32 %v2791_v47, %v1483_v40 }
 0xd6a   :  { %1487 = vmax.xlane.f32.xlu0 %v1486_v43 }
 0xd6b   :  { %v1489_v48 = vsel %vm254_vm5, %v1485_v45, -inf }
 0xd6c   :  { %1490 = vmax.xlane.f32.xlu1 %v1489_v48  ;;  %v1602_v22 = vpop.f32.mrb[40].mxu0 }
 0xd6d   :  { %v1609_v50 = vmul.f32 0.35355338, %v1602_v22  ;;  %v2562_v15 = vpop.f32.mrb[41].mxu0 }
 0xd6e   :  { %v1605_v16 = vpop.f32.mrb[42].mxu0 }
 0xd6f   :  { %v1610_v51 = vmul.f32 0.35355338, %v1605_v16  ;;  %v2563_v29 = vpop.f32.mrb[43].mxu0  ;;  %v1611_v52 = vadd.f32 %v2790_v42, %v1609_v50 }
 0xd71   :  { %v1613_v54 = vsel %vm250_vm4, %v1611_v52, -inf  ;;  %v1612_v34 = vadd.f32 %v2791_v47, %v1610_v51 }
 0xd72   :  { %1614 = vmax.xlane.f32.xlu0 %v1613_v54 }
 0xd73   :  { %v1616_v55 = vsel %vm254_vm5, %v1612_v34, -inf }
 0xd74   :  { %1617 = vmax.xlane.f32.xlu1 %v1616_v55 }
 0xde7   :  { %v1234_v26 = vpop.xlane.xlu1 %1233 }
 0xde8   :  { %v1238_v37 = vsub.f32 %v1230_v7, %v1234_v26 }
 0xde9   :  { %v1237_v56 = vpop.xlane.xlu0 %1236 }
 0xdea   :  { %v1240_v17 = vmul.f32 1.442695, %v1238_v37  ;;  %v1239_v57 = vsub.f32 %v1231_v9, %v1237_v56 }
 0xdec   :  { %2740 = vpow2.f32 %v1240_v17  ;;  %v1242_v23 = vmul.f32 1.442695, %v1239_v57 }
 0xdee   :  { %2742 = vpow2.f32 %v1242_v23 }
 0xdef   :  { %v1361_v59 = vpop.xlane.xlu0 %1360 }
 0xdf0   :  { %v1365_v60 = vsub.f32 %v1357_v30, %v1361_v59 }
 0xdf1   :  { %v1364_v8 = vpop.xlane.xlu1 %1363 }
 0xdf2   :  { %v1367_v61 = vmul.f32 1.442695, %v1365_v60  ;;  %v1366_v9 = vsub.f32 %v1358_v28, %v1364_v8 }
 0xdf4   :  { %2744 = vpow2.f32 %v1367_v61  ;;  %v1369_v13 = vmul.f32 1.442695, %v1366_v9 }
 0xdf6   :  { %v2741_v63 = vpop.eup %2740  ;;  %2746 = vpow2.f32 %v1369_v13 }
 0xdf7   :  { %v1244_v0 = vsel %vm250_vm4, %v2741_v63, 0.0  ;;  %v1488_v11 = vpop.xlane.xlu0 %1487 }
 0xdf8   :  { %v2743_v2 = vpop.eup %2742  ;;  %1245 = vadd.xlane.f32.xlu0 %v1244_v0  ;;  %v1492_v14 = vsub.f32 %v1484_v44, %v1488_v11 }
 0xdf9   :  { %v1247_v3 = vsel %vm254_vm5, %v2743_v2, 0.0  ;;  %v1491_v10 = vpop.xlane.xlu1 %1490 }
 0xdfa   :  { %1248 = vadd.xlane.f32.xlu1 %v1247_v3  ;;  %v1493_v5 = vsub.f32 %v1485_v45, %v1491_v10  ;;  %v1494_v31 = vmul.f32 1.442695, %v1492_v14 }
 0xdfc   :  { %v1496_v30 = vmul.f32 1.442695, %v1493_v5 }
 0xdfe   :  { %v3276_v4 = vpop.eup %2744  ;;  %2748 = vpow2.f32 %v1496_v30 }
 0xdff   :  { %v1371_v7 = vsel %vm250_vm4, %v3276_v4, 0.0  ;;  %v1615_v18 = vpop.xlane.xlu0 %1614  ;;  %2750 = vpow2.f32 %v1494_v31 }
 0xe00   :  { %1372 = vadd.xlane.f32.xlu0 %v1371_v7  ;;  %v1619_v32 = vsub.f32 %v1611_v52, %v1615_v18  ;;  %v2747_v39 = vpop.eup %2746 }
 0xe01   :  { %v1618_v6 = vpop.xlane.xlu1 %1617  ;;  %v1374_v28 = vsel %vm254_vm5, %v2747_v39, 0.0 }
 0xe02   :  { %v1620_v24 = vsub.f32 %v1612_v34, %v1618_v6  ;;  %v1621_v38 = vmul.f32 1.442695, %v1619_v32 }
 0xe04   :  { %v1623_v35 = vmul.f32 1.442695, %v1620_v24 }
 0xe06   :  { %2752 = vpow2.f32 %v1623_v35 }
 0xe07   :  { %2754 = vpow2.f32 %v1621_v38 }
 0xe08   :  { %v2749_v40 = vpop.eup %2748 }
 0xe09   :  { %v2751_v41 = vpop.eup %2750  ;;  %v1501_v42 = vsel %vm254_vm5, %v2749_v40, 0.0 }
 0xe0a   :  { %v1498_v43 = vsel %vm250_vm4, %v2751_v41, 0.0 }
 0xe0b   :  { %1382 = vrot.lane.b32.xlu1 %v3219_v53, %s2825_s4 }
 0xe10   :  { %v3286_v44 = vpop.eup %2752 }
 0xe11   :  { %v2755_v47 = vpop.eup %2754  ;;  %v1628_v45 = vsel %vm254_vm5, %v3286_v44, 0.0 }
 0xe12   :  { %v1625_v48 = vsel %vm250_vm4, %v2755_v47, 0.0 }
 0xe16   :  { %1255 = vrot.lane.b32.xlu0 %v3219_v53, %s2826_s15 }
 0xe2f   :  { %1375 = vadd.xlane.f32.xlu1 %v1374_v28 }
 0xe33   :  { %1502 = vadd.xlane.f32.xlu1 %v1501_v42 }
 0xe35   :  { %1499 = vadd.xlane.f32.xlu0 %v1498_v43 }
 0xe37   :  { %1629 = vadd.xlane.f32.xlu1 %v1628_v45  ;;  %v2683_v45 = vld [vmem:[%s3458_s6 + $0x18] sm:$0xff]  }
 0xe39   :  { %1626 = vadd.xlane.f32.xlu0 %v1625_v48 }
 0xe48   :  { %1509 = vrot.lane.b32.xlu1 %v3219_v53, %s2827_s0 }
 0xe4f   :  { %1636 = vrot.lane.b32.xlu0 %v3219_v53, %s2828_s16 }
 0xe85   :  { %v1246_v22 = vpop.xlane.xlu0 %1245 }
 0xe86   :  { %2756 = vrcp.f32 %v1246_v22 }
 0xe87   :  { %v1249_v50 = vpop.xlane.xlu1 %1248 }
 0xe88   :  { %2758 = vrcp.f32 %v1249_v50 }
 0xe8b   :  { %v1383_v55 = vpop.permute.xlu1 %1382 }
 0xe8c   :  { %v1388_v37 = vsel %vm280_vm6, %v1383_v55, 0 }
 0xe8d   :  { %v1373_v15 = vpop.xlane.xlu0 %1372 }
 0xe8e   :  { %2760 = vrcp.f32 %v1373_v15 }
 0xe90   :  { %v2757_v16 = vpop.eup %2756 }
 0xe91   :  { %v1256_v51 = vpop.permute.xlu0 %1255  ;;  %v1252_v54 = vmul.f32 %v2757_v16, %v2741_v63 }
 0xe92   :  { %v2759_v29 = vpop.eup %2758  ;;  %v1261_v52 = vsel %vm280_vm6, %v1256_v51, 0 }
 0xe93   :  { %v1253_v34 = vmul.f32 %v2759_v29, %v2743_v2  ;;  %2529 = vmatpush3.bf16.msra.mxu1 %v1261_v52 }
 0xe94   :  { %2540 = vmatprep.subr.bf16.mxu1 %v2816_v1 }
 0xe95   :  { %v1254_v26 = vpack.c.bf16 %v1253_v34, %v1252_v54 }
 0xe97   :  { %2531 = vmatmul.mubr.msk.bf16.vlgmr.msra.gmra.mrb[28].mxu1 %vm250_vm4, %v1254_v26 }
 0xe98   :  { %2541 = vmatpush3.bf16.msra.mxu1 %v1388_v37  ;;  %2542 = vmatprep.mubr.msk.bf16.mxu1 %vm2817_vm0, %v2816_v1  ;;  %v2761_v23 = vpop.eup %2760 }
 0xe99   :  { %2552 = vmatprep.subr.bf16.mxu1 %v2816_v1  ;;  %v1379_v61 = vmul.f32 %v2761_v23, %v3276_v4 }
 0xebc   :  { %v1376_v53 = vpop.xlane.xlu1 %1375 }
 0xebd   :  { %2762 = vrcp.f32 %v1376_v53 }
 0xec0   :  { %v1503_v56 = vpop.xlane.xlu1 %1502 }
 0xec1   :  { %2764 = vrcp.f32 %v1503_v56 }
 0xec2   :  { %v1500_v17 = vpop.xlane.xlu0 %1499 }
 0xec3   :  { %2766 = vrcp.f32 %v1500_v17 }
 0xec4   :  { %v1630_v57 = vpop.xlane.xlu1 %1629 }
 0xec6   :  { %v1627_v59 = vpop.xlane.xlu0 %1626 }
 0xec7   :  { %v2763_v60 = vpop.eup %2762  ;;  %2768 = vrcp.f32 %v1627_v59 }
 0xec8   :  { %v1380_v63 = vmul.f32 %v2763_v60, %v2747_v39  ;;  %v1510_v0 = vpop.permute.xlu1 %1509  ;;  %2770 = vrcp.f32 %v1630_v57 }
 0xec9   :  { %v1515_v7 = vsel %vm280_vm6, %v1510_v0, 0 }
 0xeca   :  { %v1381_v2 = vpack.c.bf16 %v1380_v63, %v1379_v61  ;;  %v1637_v4 = vpop.permute.xlu0 %1636 }
 0xecb   :  { %v2765_v3 = vpop.eup %2764  ;;  %v1642_v5 = vsel %vm280_vm6, %v1637_v4, 0 }
 0xecc   :  { %2543 = vmatmul.mubr.msk.bf16.vlgmr.msra.gmra.mrb[32].mxu1 %vm250_vm4, %v1381_v2  ;;  %v1507_v10 = vmul.f32 %v2765_v3, %v2749_v40  ;;  %v2682_v40 = vld [vmem:[%s3458_s6 + $0x10] sm:$0xff]   ;;  %v1724_v2 = vrot.slane %v3215_v49, %v3102_v27 }
 0xecd   :  { %v2767_v8 = vpop.eup %2766  ;;  %2553 = vmatpush3.bf16.msra.mxu1 %v1515_v7  ;;  %2554 = vmatprep.mubr.msk.bf16.mxu1 %vm2817_vm0, %v2816_v1 }
 0xece   :  { %v1506_v9 = vmul.f32 %v2767_v8, %v2751_v41  ;;  %2564 = vmatprep.subr.bf16.mxu1 %v2816_v1  ;;  %2571 = vmatpush3.bf16.msra.mxu0 %v2682_v40 }
 0xecf   :  { %2572 = vmatprep.subr.bf16.mxu0 %v2816_v1 }
 0xed0   :  { %v1508_v11 = vpack.c.bf16 %v1507_v10, %v1506_v9 }
 0xed1   :  { %v2769_v13 = vpop.eup %2768 }
 0xed2   :  { %v2771_v6 = vpop.eup %2770  ;;  %v1633_v14 = vmul.f32 %v2769_v13, %v2755_v47  ;;  %2573 = vmatpush3.bf16.msra.mxu0 %v2683_v45 }
 0xed3   :  { %v1634_v18 = vmul.f32 %v2771_v6, %v3286_v44  ;;  %2586 = vmatprep.subr.bf16.mxu0 %v2816_v1 }
 0xed4   :  { %2555 = vmatmul.mubr.msk.bf16.vlgmr.msra.gmra.mrb[36].mxu1 %vm250_vm4, %v1508_v11 }
 0xed5   :  { %2565 = vmatpush3.bf16.msra.mxu1 %v1642_v5  ;;  %2566 = vmatprep.mubr.msk.bf16.mxu1 %vm2817_vm0, %v2816_v1  ;;  %v1635_v30 = vpack.c.bf16 %v1634_v18, %v1633_v14 }
 0xed6   :  { %2578 = vmatprep.subr.bf16.mxu1 %v2816_v1 }
 0xedc   :  { %2567 = vmatmul.mubr.msk.bf16.vlgmr.msra.gmra.mrb[40].mxu1 %vm250_vm4, %v1635_v30 }
 0xedd   :  { %2582 = vmatprep.mubr.msk.bf16.mxu1 %vm2817_vm0, %v2816_v1 }
 0xf6a   :  { %v1297_v24 = vpop.f32.mrb[28].mxu1 }
 0xf6b   :  { %v2532_v31 = vpop.f32.mrb[29].mxu1 }
 0xf6c   :  { %v1300_v32 = vpop.f32.mrb[30].mxu1 }
 0xf6d   :  { %v2533_v35 = vpop.f32.mrb[31].mxu1 }
 0xf9f   :  { %v1424_v38 = vpop.f32.mrb[32].mxu1 }
 0xfa0   :  { %v2544_v39 = vpop.f32.mrb[33].mxu1 }
 0xfa1   :  { %v1427_v28 = vpop.f32.mrb[34].mxu1 }
 0xfa2   :  { %v2651_v41 = vpack.i.bf16 %v1427_v28, %v1424_v38  ;;  %v2545_v42 = vpop.f32.mrb[35].mxu1  ;;  %v2685_v28 = vld [vmem:[%s3459_s7 + $0x18] sm:$0xff]  }
 0xfa4   :  { %2652 = vrot.lane.b32.xlu1 %v2651_v41, %s2829_s19 }
 0xfa7   :  { %v1551_v44 = vpop.f32.mrb[36].mxu1 }
 0xfa8   :  { %v2556_v43 = vpop.f32.mrb[37].mxu1 }
 0xfa9   :  { %v1554_v47 = vpop.f32.mrb[38].mxu1 }
 0xfaa   :  { %v2656_v48 = vpack.i.bf16 %v1554_v47, %v1551_v44  ;;  %v2557_v22 = vpop.f32.mrb[39].mxu1 }
 0xfac   :  { %2657 = vrot.lane.b32.xlu0 %v2656_v48, %s2830_s21  ;;  %v1812_v48 = vrot.slane %v3215_v49, %v835_v58  ;;  %v2686_v58 = vld [vmem:[%s3460_s8 + $0x20] sm:$0xff]  }
 0xfaf   :  { %v1678_v50 = vpop.f32.mrb[40].mxu1 }
 0xfb0   :  { %v2568_v15 = vpop.f32.mrb[41].mxu1 }
 0xfb1   :  { %v1681_v16 = vpop.f32.mrb[42].mxu1 }
 0xfb2   :  { %v2661_v51 = vpack.i.bf16 %v1681_v16, %v1678_v50  ;;  %v2569_v29 = vpop.f32.mrb[43].mxu1 }
 0xfb4   :  { %2662 = vrot.lane.b32.xlu1 %v2661_v51, %s2831_s29  ;;  %v1818_v51 = vrot.slane %v3215_v49, %v841_v62  ;;  %v2687_v62 = vld [vmem:[%s3460_s8 + $0x28] sm:$0xff]  }
0x1016   :  { %v2653_v52 = vpop.permute.xlu1 %2652 }
0x1017   :  { %v2655_v34 = vunpack.i.h.bf16 %v2653_v52  ;;  %v2654_v55 = vunpack.i.l.bf16 %v2653_v52 }
0x1019   :  { %v1710_v56 = vsel %vm198_vm3, %v1300_v32, %v2655_v34  ;;  %v1709_v17 = vsel %vm198_vm3, %v1297_v24, %v2654_v55  ;;  %v2688_v55 = vld [vmem:[%s3460_s8 + $0x30] sm:$0xff]  }
0x101e   :  { %v2658_v54 = vpop.permute.xlu0 %2657 }
0x101f   :  { %v2660_v26 = vunpack.i.h.bf16 %v2658_v54  ;;  %v2659_v37 = vunpack.i.l.bf16 %v2658_v54 }
0x1021   :  { %v1712_v59 = vsel %vm732_vm7, %v1710_v56, %v2660_v26  ;;  %v1711_v60 = vsel %vm732_vm7, %v1709_v17, %v2659_v37  ;;  %v2689_v26 = vld [vmem:[%s3460_s8 + $0x38] sm:$0xff]   ;;  %v1830_v37 = vrot.slane %v3215_v49, %v3154_v12 }
0x1026   :  { %v2663_v53 = vpop.permute.xlu1 %2662 }
0x1027   :  { %v2665_v57 = vunpack.i.h.bf16 %v2663_v53  ;;  %v2664_v23 = vunpack.i.l.bf16 %v2663_v53 }
0x1029   :  { %v1714_v61 = vsel %vm735_vm8, %v1712_v59, %v2665_v57  ;;  %v1713_v63 = vsel %vm735_vm8, %v1711_v60, %v2664_v23 }
0x102a   :  { %v1715_v0 = vpack.c.bf16 %v1714_v61, %v1713_v63 }
0x102c   :  { %2575 = vmatmul.mubr.msk.bf16.vlgmr.msra.gmra.mrb[44].mxu0 %vm149_vm2, %v1715_v0 }
0x102d   :  { %2594 = vmatprep.mubr.msk.bf16.mxu0 %vm2817_vm0, %v2816_v1  ;;  %2587 = vmatpush3.bf16.msra.mxu0 %v2686_v58 }
0x102e   :  { %2588 = vmatprep.subr.bf16.mxu0 %v2816_v1 }
0x1031   :  { %2589 = vmatpush3.bf16.msra.mxu0 %v2687_v62 }
0x1032   :  { %2590 = vmatprep.subr.bf16.mxu0 %v2816_v1 }
0x1035   :  { %2591 = vmatpush3.bf16.msra.mxu0 %v2688_v55 }
0x1036   :  { %2592 = vmatprep.subr.bf16.mxu0 %v2816_v1 }
0x1039   :  { %2593 = vmatpush3.bf16.msra.mxu0 %v2689_v26 }
0x10ff   :  { %v1774_v3 = vpop.f32.mrb[44].mxu0 }
0x1100   :  { %v1775_v7 = vadd.f32 %v1774_v3, %v1724_v2  ;;  %v2576_v8 = vpop.f32.mrb[45].mxu0 }
0x1101   :  { %v1777_v9 = vpop.f32.mrb[46].mxu0 }
0x1102   :  { %v1778_v10 = vadd.f32 %v1777_v9, %v1724_v2  ;;  %v2577_v4 = vpop.f32.mrb[47].mxu0  ;;  %v1781_v11 = vadd.f32 %v1775_v7, %v3203_v46 }
0x1104   :  { %v1783_v13 = vsel %vm149_vm2, %v1781_v11, 0.0  ;;  %v1782_v5 = vadd.f32 %v1778_v10, %v3205_v25  ;;  %v2684_v25 = vld [vmem:[%s3459_s7 + $0x10] sm:$0xff]  }
0x1105   :  { %1784 = vadd.xlane.f32.xlu0 %v1783_v13  ;;  %2579 = vmatpush3.bf16.msra.mxu1 %v2684_v25 }
0x1106   :  { %v1786_v6 = vsel %vm808_vm9, %v1782_v5, 0.0  ;;  %2580 = vmatprep.subr.bf16.mxu1 %v2816_v1 }
0x1107   :  { %1787 = vadd.xlane.f32.xlu1 %v1786_v6 }
0x1109   :  { %2581 = vmatpush3.bf16.msra.mxu1 %v2685_v28 }
0x1192   :  { %v1785_v14 = vpop.xlane.xlu0 %1784 }
0x1193   :  { %v1789_v18 = vmul.f32 0.03125, %v1785_v14 }
0x1194   :  { %v1788_v30 = vpop.xlane.xlu1 %1787 }
0x1195   :  { %v1791_v24 = vsub.f32 %v1781_v11, %v1789_v18  ;;  %v1790_v31 = vmul.f32 0.03125, %v1788_v30 }
0x1197   :  { %v1792_v32 = vsub.f32 %v1782_v5, %v1790_v31  ;;  %v1793_v35 = vmul.f32 %v1791_v24, %v1791_v24 }
0x1199   :  { %v1795_v38 = vsel %vm149_vm2, %v1793_v35, 0.0  ;;  %v1794_v39 = vmul.f32 %v1792_v32, %v1792_v32 }
0x119a   :  { %1796 = vadd.xlane.f32.xlu0 %v1795_v38 }
0x119b   :  { %v1798_v46 = vsel %vm808_vm9, %v1794_v39, 0.0 }
0x119e   :  { %1799 = vadd.xlane.f32.xlu0 %v1798_v46 }
0x1227   :  { %v1797_v40 = vpop.xlane.xlu0 %1796 }
0x1228   :  { %v1801_v41 = vmul.f32 0.03125, %v1797_v40 }
0x122a   :  { %v1803_v42 = vadd.f32 1e-05, %v1801_v41 }
0x122b   :  { %v1800_v44 = vpop.xlane.xlu0 %1799 }
0x122c   :  { %2772 = vrsqrt.f32 %v1803_v42  ;;  %v1802_v43 = vmul.f32 0.03125, %v1800_v44 }
0x122e   :  { %v1804_v47 = vadd.f32 1e-05, %v1802_v43 }
0x1230   :  { %2774 = vrsqrt.f32 %v1804_v47 }
0x1236   :  { %v2773_v45 = vpop.eup %2772 }
0x1237   :  { %v1807_v22 = vmul.f32 %v2773_v45, %v1791_v24 }
0x1239   :  { %v1813_v15 = vmul.f32 %v1812_v48, %v1807_v22 }
0x123a   :  { %v2775_v50 = vpop.eup %2774 }
0x123b   :  { %v1808_v16 = vmul.f32 %v2775_v50, %v1792_v32  ;;  %v3359_v52 = vadd.f32 %v1818_v51, %v1813_v15 }
0x123d   :  { %v1814_v29 = vmul.f32 %v1812_v48, %v1808_v16 }
0x123f   :  { %v3361_v54 = vadd.f32 %v1818_v51, %v1814_v29 }
0x1241   :  { %v1821_v34 = vpack.c.bf16 %v3361_v54, %v3359_v52 }
0x1243   :  { %2583 = vmatmul.mubr.msk.bf16.vlgmr.msra.gmra.mrb[44].mxu1 %vm149_vm2, %v1821_v34 }
0x1244   :  { %2602 = vmatprep.mubr.msk.f32.mxu1 %vm2817_vm0, %v2816_v1 }
0x1316   :  { %v1880_v53 = vpop.f32.mrb[44].mxu1 }
0x1317   :  { %v3385_v56 = vadd.f32 %v1880_v53, %v1830_v37  ;;  %v2584_v17 = vpop.f32.mrb[45].mxu1 }
0x1318   :  { %v1883_v57 = vpop.f32.mrb[46].mxu1 }
0x1319   :  { %v3388_v23 = vmul.f32 0.70710677, %v3385_v56  ;;  %v3390_v59 = vadd.f32 %v1883_v57, %v1830_v37  ;;  %v2585_v60 = vpop.f32.mrb[47].mxu1 }
0x131b   :  { %v1891_v61 = vand.u32 2147483647, %v3388_v23  ;;  %v3394_v63 = vmul.f32 0.70710677, %v3390_v59  ;;  %vm1953_vm12 = vcmp.ge.f32.partialorder %v3388_v23, 0.0  ;;  %v1978_v23 = vrot.slane %v3215_v49, %v999_v19 }
0x131d   :  { %v1893_v0 = vmul.f32 0.5, %v1891_v61  ;;  %v1892_v2 = vand.u32 2147483647, %v3394_v63  ;;  %v1941_v22 = vsub.f32 0.0, %v1891_v61  ;;  %vm1954_vm13 = vcmp.ge.f32.partialorder %v3394_v63, 0.0 }
0x131f   :  { %v1895_v3 = vadd.f32 1.0, %v1893_v0  ;;  %v1894_v7 = vmul.f32 0.5, %v1892_v2  ;;  %v1943_v37 = vmul.f32 %v1941_v22, %v1891_v61  ;;  %v1942_v53 = vsub.f32 0.0, %v1892_v2 }
0x1321   :  { %2776 = vrcp.f32 %v1895_v3  ;;  %v1896_v8 = vadd.f32 1.0, %v1894_v7 }
0x1323   :  { %2778 = vrcp.f32 %v1896_v8 }
0x132b   :  { %v2777_v9 = vpop.eup %2776 }
0x132c   :  { %v1899_v10 = vmul.f32 %v2777_v9, %v2777_v9  ;;  %v1909_v4 = vmul.f32 0.09678418, %v2777_v9  ;;  %v1913_v13 = vmul.f32 0.27886808, %v2777_v9  ;;  %v1917_v5 = vmul.f32 1.4885159, %v2777_v9 }
0x132d   :  { %v2779_v11 = vpop.eup %2778  ;;  %v1905_v6 = vmul.f32 1.0000237, %v2777_v9  ;;  %v1921_v31 = vmul.f32 0.17087276, %v2777_v9 }
0x132e   :  { %v1911_v14 = vadd.f32 0.37409195, %v1909_v4  ;;  %v1901_v18 = vmul.f32 %v1899_v10, %v1899_v10  ;;  %v1919_v30 = vadd.f32 -1.135204, %v1917_v5  ;;  %v1900_v24 = vmul.f32 %v2779_v11, %v2779_v11 }
0x132f   :  { %v1910_v35 = vmul.f32 0.09678418, %v2779_v11  ;;  %v1914_v38 = vmul.f32 0.27886808, %v2779_v11  ;;  %v1915_v39 = vadd.f32 -0.18628806, %v1913_v13  ;;  %v1944_v13 = vmul.f32 %v1942_v53, %v1892_v2 }
0x1330   :  { %v1925_v32 = vmul.f32 %v1911_v14, %v1899_v10  ;;  %v1929_v46 = vmul.f32 %v1919_v30, %v1899_v10  ;;  %v1918_v25 = vmul.f32 1.4885159, %v2779_v11  ;;  %v1907_v28 = vadd.f32 -1.2655122, %v1905_v6 }
0x1331   :  { %v1906_v40 = vmul.f32 1.0000237, %v2779_v11  ;;  %v1912_v41 = vadd.f32 0.37409195, %v1910_v35  ;;  %v1903_v42 = vmul.f32 %v1901_v18, %v1901_v18  ;;  %v1902_v43 = vmul.f32 %v1900_v24, %v1900_v24 }
0x1332   :  { %v1931_v44 = vadd.f32 %v1929_v46, %v1915_v39  ;;  %v1920_v47 = vadd.f32 -1.135204, %v1918_v25  ;;  %v1923_v45 = vadd.f32 -0.82215226, %v1921_v31  ;;  %v1927_v48 = vadd.f32 %v1925_v32, %v1907_v28 }
0x1333   :  { %v1916_v50 = vadd.f32 -0.18628806, %v1914_v38  ;;  %v1922_v16 = vmul.f32 0.17087276, %v2779_v11  ;;  %v1926_v51 = vmul.f32 %v1912_v41, %v1900_v24  ;;  %v1908_v34 = vadd.f32 -1.2655122, %v1906_v40 }
0x1334   :  { %v1933_v15 = vmul.f32 %v1931_v44, %v1901_v18  ;;  %v1930_v29 = vmul.f32 %v1920_v47, %v1900_v24  ;;  %v1937_v62 = vmul.f32 %v1923_v45, %v1903_v42  ;;  %v1904_v55 = vmul.f32 %v1902_v43, %v1902_v43 }
0x1335   :  { %v1924_v57 = vadd.f32 -0.82215226, %v1922_v16  ;;  %v1928_v60 = vadd.f32 %v1926_v51, %v1908_v34  ;;  %v1887_v2 = vmul.f32 0.5, %v3385_v56  ;;  %v1888_v25 = vmul.f32 0.5, %v3390_v59 }
0x1336   :  { %v1935_v58 = vadd.f32 %v1933_v15, %v1927_v48  ;;  %v1932_v26 = vadd.f32 %v1930_v29, %v1916_v50 }
0x1337   :  { %v1938_v8 = vmul.f32 %v1924_v57, %v1904_v55  ;;  %v2078_v57 = vrot.slane %v3215_v49, %v1099_v33  ;;  %v2088_v33 = vld [vmem:[%s3455_s3] sm:$0x3] }
0x1338   :  { %v1939_v17 = vadd.f32 %v1937_v62, %v1935_v58  ;;  %v1934_v0 = vmul.f32 %v1932_v26, %v1902_v43  ;;  %v2832_v62 = vmov 0.0|0.0  }
0x1339   :  { %2613 = vmatprep.subr.bf16.mxu1 %v2832_v62 }
0x133a   :  { %v1945_v3 = vadd.f32 %v1943_v37, %v1939_v17  ;;  %v1936_v7 = vadd.f32 %v1934_v0, %v1928_v60 }
0x133c   :  { %v1947_v10 = vmul.f32 1.442695, %v1945_v3  ;;  %v1940_v4 = vadd.f32 %v1938_v8, %v1936_v7 }
0x133e   :  { %2780 = vpow2.f32 %v1947_v10  ;;  %v1946_v5 = vadd.f32 %v1944_v13, %v1940_v4  ;;  %v2084_v10 = vrot.slane %v3215_v49, %v1105_v36 }
0x1340   :  { %v1949_v6 = vmul.f32 1.442695, %v1946_v5 }
0x1342   :  { %2782 = vpow2.f32 %v1949_v6 }
0x1348   :  { %v2781_v14 = vpop.eup %2780 }
0x1349   :  { %v1951_v18 = vmul.f32 %v2781_v14, %v2777_v9 }
0x134b   :  { %v1955_v30 = vsub.f32 1.0, %v1951_v18  ;;  %v2327_v24 = vadd.f32 -1.0, %v1951_v18 }
0x134c   :  { %v2783_v61 = vpop.eup %2782 }
0x134d   :  { %v1959_v31 = vsel %vm1953_vm12, %v1955_v30, %v2327_v24  ;;  %v1952_v32 = vmul.f32 %v2783_v61, %v2779_v11 }
0x134e   :  { %v1961_v39 = vadd.f32 1.0, %v1959_v31  ;;  %v2690_v31 = vld [vmem:[%s3462_s10] sm:$0xff]  }
0x134f   :  { %v1956_v35 = vsub.f32 1.0, %v1952_v32  ;;  %v2328_v38 = vadd.f32 -1.0, %v1952_v32  ;;  %v2691_v32 = vld [vmem:[%s3462_s10 + $0x8] sm:$0xff]   ;;  %s2834_s10 = smov [#allocation2]  }
0x1350   :  { %v1963_v40 = vmul.f32 %v1961_v39, %v1887_v2  ;;  %s2260_s9 = sshll.u32 %s2834_s10, 4  ;;  %s2261_s9 = int_to_ptr.vmem [resolvable:$true] %s2260_s9 }
0x1351   :  { %v1960_v46 = vsel %vm1954_vm13, %v1956_v35, %v2328_v38  ;;  %p2797_p1 = scmp.lt.s32.totalorder %s2261_s9, %s2261_s9 }
0x1352   :  { %v1962_v28 = vadd.f32 1.0, %v1960_v46  ;;  %v2087_v46 = vld [vmem:[%s3463_s11] sm:$0xff]  ;;  %s2792_s11 = scalar_lea.vmem %s2261_s9, 32 }
0x1353   :  { %v2182_v2 = vrot.slane %v2087_v46, %v2957_v21  ;;  %p2793_p0 = scmp.ne.s32.totalorder %s2261_s9, %s2792_s11  ;;  %p2798_p2 = scmp.lt.s32.totalorder %s2792_s11, %s2792_s11 }
0x1354   :  { %v1964_v9 = vmul.f32 %v1962_v28, %v1888_v25  ;;  %v2187_v28 = vrot.slane %v2087_v46, %v3102_v27 }
0x1355   :  { %p2799_p3 = por %p2798_p2, %p2797_p1 }
0x1356   :  { %v1965_v41 = vpack.c.bf16 %v1964_v9, %v1963_v40 }
0x1357   :  { %p2800_p4 = pnand %p2799_p3, %p2793_p0 }
0x1358   :  { %2595 = vmatmul.mubr.msk.bf16.vlgmr.msra.gmra.mrb[48].mxu0 %vm82_vm1, %v1965_v41  ;;  %vm2615_vm1 = vmpackc.low %vm2092_vm14, %vm2833_vm15 }
0x142b   :  { %v2040_v11 = vpop.f32.mrb[48].mxu0 }
0x142c   :  { %v2041_v42 = vadd.f32 %v2040_v11, %v1978_v23  ;;  %v2596_v44 = vpop.f32.mrb[49].mxu0 }
0x142d   :  { %v2043_v43 = vpop.f32.mrb[50].mxu0 }
0x142e   :  { %v2044_v63 = vadd.f32 %v2043_v43, %v1978_v23  ;;  %v2597_v47 = vpop.f32.mrb[51].mxu0  ;;  %v2047_v56 = vadd.f32 %v2041_v42, %v3359_v52 }
0x1430   :  { %v2049_v59 = vsel %vm149_vm2, %v2047_v56, 0.0  ;;  %v2048_v45 = vadd.f32 %v2044_v63, %v3361_v54 }
0x1431   :  { %2050 = vadd.xlane.f32.xlu1 %v2049_v59 }
0x1432   :  { %v2052_v48 = vsel %vm808_vm9, %v2048_v45, 0.0 }
0x1433   :  { %2053 = vadd.xlane.f32.xlu0 %v2052_v48 }
0x14be   :  { %v2051_v22 = vpop.xlane.xlu1 %2050 }
0x14bf   :  { %v2055_v50 = vmul.f32 0.03125, %v2051_v22 }
0x14c0   :  { %v2054_v15 = vpop.xlane.xlu0 %2053 }
0x14c1   :  { %v2057_v19 = vsub.f32 %v2047_v56, %v2055_v50  ;;  %v2056_v16 = vmul.f32 0.03125, %v2054_v15 }
0x14c3   :  { %v2058_v51 = vsub.f32 %v2048_v45, %v2056_v16  ;;  %v2059_v29 = vmul.f32 %v2057_v19, %v2057_v19 }
0x14c5   :  { %v2061_v34 = vsel %vm149_vm2, %v2059_v29, 0.0  ;;  %v2060_v58 = vmul.f32 %v2058_v51, %v2058_v51 }
0x14c6   :  { %2062 = vadd.xlane.f32.xlu1 %v2061_v34 }
0x14c7   :  { %v2064_v52 = vsel %vm808_vm9, %v2060_v58, 0.0 }
0x14c8   :  { %2065 = vadd.xlane.f32.xlu0 %v2064_v52 }
0x1553   :  { %v2063_v54 = vpop.xlane.xlu1 %2062 }
0x1554   :  { %v2067_v55 = vmul.f32 0.03125, %v2063_v54 }
0x1555   :  { %v2066_v26 = vpop.xlane.xlu0 %2065 }
0x1556   :  { %v2069_v37 = vadd.f32 1e-05, %v2067_v55  ;;  %v2068_v53 = vmul.f32 0.03125, %v2066_v26 }
0x1558   :  { %2784 = vrsqrt.f32 %v2069_v37  ;;  %v2070_v17 = vadd.f32 1e-05, %v2068_v53 }
0x155a   :  { %2786 = vrsqrt.f32 %v2070_v17 }
0x1562   :  { %v2785_v60 = vpop.eup %2784 }
0x1563   :  { %v2073_v0 = vmul.f32 %v2785_v60, %v2057_v19 }
0x1564   :  { %v2787_v3 = vpop.eup %2786 }
0x1565   :  { %v2079_v7 = vmul.f32 %v2078_v57, %v2073_v0  ;;  %v2074_v8 = vmul.f32 %v2787_v3, %v2058_v51 }
0x1567   :  { %v2080_v4 = vmul.f32 %v2078_v57, %v2074_v8  ;;  %v2085_v13 = vadd.f32 %v2084_v10, %v2079_v7 }
0x1569   :  { %v2086_v5 = vadd.f32 %v2084_v10, %v2080_v4 }
0x156b   :  { %v2614_v6 = vpack.c.bf16 %v2086_v5, %v2085_v13 }
0x156d   :  { %2616 = vmatpush3.bf16.msk.msra.mxu1 %vm2615_vm1, %v2614_v6 }
0x156e   :  { %2605 = vmatprep.subr.bf16.mxu1 %v2816_v1 }
0x1570   :  { %2603 = vmatmul.mubr.msk.f32.vlgmr.msra.gmra.mrb[48].mxu1 %vm250_vm4, %v2088_v33 }
0x1571   :  { %2609 = vmatprep.mubr.msk.bf16.mxu1 %vm2817_vm0, %v2816_v1  ;;  %2606 = vmatpush3.bf16.msra.mxu1 %v2690_v31 }
0x1572   :  { %2607 = vmatprep.subr.bf16.mxu1 %v2816_v1  ;;  %v2197_v1 = vrot.slane %v2087_v46, %v3154_v12 }
0x1575   :  { %2608 = vmatpush3.bf16.msra.mxu1 %v2691_v32 }
0x1643   :  { %v2162_v20 = vpop.f32.mrb[48].mxu1 }
0x1644   :  { %v2166_v36 = vsel %vm808_vm9, %v2162_v20, 0.0  ;;  %v2604_v49 = vpop.f32.mrb[49].mxu1 }
0x1645   :  { %2167 = vadd.xlane.f32.xlu1 %v2166_v36 }
0x16d2   :  { %v2168_v14 = vpop.xlane.xlu1 %2167 }
0x16d3   :  { %v2169_v18 = vmul.f32 0.03125, %v2168_v14 }
0x16d5   :  { %v2170_v30 = vsub.f32 %v2162_v20, %v2169_v18 }
0x16d7   :  { %v2171_v24 = vmul.f32 %v2170_v30, %v2170_v30 }
0x16d9   :  { %v2172_v61 = vsel %vm808_vm9, %v2171_v24, 0.0 }
0x16da   :  { %2173 = vadd.xlane.f32.xlu0 %v2172_v61 }
0x1767   :  { %v2174_v35 = vpop.xlane.xlu0 %2173 }
0x1768   :  { %v2175_v38 = vmul.f32 0.03125, %v2174_v35 }
0x176a   :  { %v2176_v39 = vadd.f32 1e-05, %v2175_v38 }
0x176c   :  { %2788 = vrsqrt.f32 %v2176_v39 }
0x1776   :  { %v2789_v25 = vpop.eup %2788 }
0x1777   :  { %v2178_v40 = vmul.f32 %v2789_v25, %v2170_v30 }
0x1779   :  { %v2183_v9 = vmul.f32 %v2182_v2, %v2178_v40 }
0x177b   :  { %v2188_v41 = vadd.f32 %v2187_v28, %v2183_v9 }
0x177d   :  { %v2189_v23 = vpack.c.bf16 %v2188_v41, %v2188_v41 }
0x177f   :  { %2610 = vmatmul.mubr.msk.bf16.vlgmr.msra.gmra.mrb[52].mxu1 %vm149_vm2, %v2189_v23 }
0x1852   :  { %v2247_v11 = vpop.f32.mrb[52].mxu1 }
0x1853   :  { %v2248_v42 = vadd.f32 %v2247_v11, %v2197_v1  ;;  %v2611_v44 = vpop.f32.mrb[53].mxu1 }
0x1854   :  { %v2250_v43 = vpop.f32.mrb[54].mxu1 }
0x1855   :  { %2253 = vst [vmem:[#allocation2] sm:$0x3] %v2248_v42  ;;  %v2612_v21 = vpop.f32.mrb[55].mxu1 }
0x1856   :  { %2803 = shalt.err (!%p2800_p4)
}
0x1857   :  { %s2804_s24 = scalar_lea.hbm %s3464_s12, 32 }
0x1858   :  { %p2805_p5 = scmp.ne.s32.totalorder %s3464_s12, %s2804_s24  ;;  %p2808_p6 = scmp.lt.u32.totalorder %s2804_s24, %s3464_s12 }
0x185a   :  { %p2810_p7 = pnand %p2808_p6, %p2805_p5 }
0x185c   :  { %2813 = shalt.err (!%p2810_p7)
}
0x185d   :  { %2263 = dma.vmem_to_hbm [thread:$0]  %s2261_s9, 32, %s3464_s12, [#allocation3]  }
0x185e   :  { %2814 = dma.done.wait [#allocation3], 32  }
0x185f   :  { %2815 = vsyncadd [#allocation3], 4294967264 }
0x1860   :  { %2267 = vsyncpa [#allocation3], 1 }

</bundles_post_ra>
